<compile_context>
chip_gen: v6e
topology: v6e:2x2x1
jax: 0.10.0
libtpu: 0.0.40
codegen_flags: <defaults>
</compile_context>

<pallas_src>
import functools
import math

import jax
import jax.numpy as jnp
from jax.experimental import pallas as pl
from jax.experimental.pallas import tpu as pltpu

NEG_SLOPE = 0.01          # F.leaky_relu default negative_slope
NEG_BIG = -1e30           # finite "masked" logit


def _round_up(x: int, m: int) -> int:
    return (x + m - 1) // m * m


def _gat_layer_kernel(s_dst_ref, s_src_ref, adjt_ref, h_ref, o_ref,
                      m_sc, l_sc, acc_sc):
    """One (dst tile, src block) step of a GAT attention layer (online softmax).

    s_dst_ref: [TN, 1]  f32   precomputed dst scores for this dst tile
    s_src_ref: [1, TK]  f32   precomputed src scores for this src block
    adjt_ref : [TN, TK] int8  adj^T block: adjt[v, u] = 1 iff edge u -> v
    h_ref    : [TK, D_pad] bf16  source-node features for this src block
    o_ref    : [TN, D_pad]       output tile (written at the last src block)
    m_sc/l_sc: [TN, 1] f32       running max / running softmax denominator
    acc_sc   : [TN, D_pad] f32   running weighted-sum accumulator
    """
    k = pl.program_id(1)

    @pl.when(k == 0)
    def _():
        m_sc[...] = jnp.full(m_sc.shape, NEG_BIG, m_sc.dtype)
        l_sc[...] = jnp.zeros(l_sc.shape, l_sc.dtype)
        acc_sc[...] = jnp.zeros(acc_sc.shape, acc_sc.dtype)

    # --- attention logits, transposed layout: e[v, u] = leaky_relu(s_dst[v] + s_src[u])
    e = s_dst_ref[...] + s_src_ref[...]                       # [TN, TK] f32 (broadcast)
    e = jnp.maximum(e, NEG_SLOPE * e)                         # leaky_relu (max form)
    edge = adjt_ref[...] != 0                                 # int8 mask, no f32 cast
    e = jnp.where(edge, e, jnp.float32(NEG_BIG))              # single slab-wide select

    # --- online (flash-style) softmax over incoming edges (lane axis = src) ---
    m_prev = m_sc[...]                                        # [TN, 1]
    m_new = jnp.maximum(m_prev, jnp.max(e, axis=-1, keepdims=True))
    # Keep the exp shift finite for rows that have not seen any edge yet, so the
    # masked exp underflows to exactly 0 instead of exp(0).
    m_safe = jnp.where(m_new < jnp.float32(0.5 * NEG_BIG), jnp.float32(0.0), m_new)
    a = jnp.exp(m_prev - m_safe)                              # [TN, 1] rescale, <= 1
    p = jnp.exp(e - m_safe)                                   # [TN, TK]; 0 on non-edges
    l_sc[...] = a * l_sc[...] + jnp.sum(p, axis=-1, keepdims=True)
    acc_sc[...] = a * acc_sc[...] + jnp.dot(
        p.astype(jnp.bfloat16), h_ref[...], preferred_element_type=jnp.float32)
    m_sc[...] = m_new

    @pl.when(k == pl.num_programs(1) - 1)
    def _():
        denom = l_sc[...]
        denom = jnp.where(denom > 0.0, denom, jnp.float32(1.0))   # isolated/padded rows
        o_ref[...] = (acc_sc[...] *
                      pl.reciprocal(denom, approx=True)).astype(o_ref.dtype)


@functools.partial(jax.jit, static_argnames=("tile_n", "tile_k", "out_dtype"))
def gat_layer_forward(h, adj, attn_w, *, tile_n=256, tile_k=512, out_dtype=jnp.float32):
    """Single GAT attention layer.

    h: [N, D], adj: [N, N] (adj[u, v] != 0 iff edge u -> v),
    attn_w: [1, 2D] = attn_fc (nn.Linear(2D, 1)) weight.
    """
    N, D = h.shape
    TN, TK = tile_n, tile_k
    assert TN % 128 == 0 and TK % 128 == 0, "tile sizes must be multiples of 128"
    N_pad = _round_up(N, math.lcm(TN, TK))
    D_pad = _round_up(D, 128)                      # lane-dense output tiles

    # Hoisted, tile-invariant attention projections (f32, once per layer).
    h32 = h.astype(jnp.float32)
    s_src_col = h32 @ attn_w[:, :D].astype(jnp.float32).T     # [N, 1] source scores
    s_dst_col = h32 @ attn_w[:, D:].astype(jnp.float32).T     # [N, 1] destination scores
    s_src = jnp.zeros((1, N_pad), jnp.float32).at[0, :N].set(s_src_col[:, 0])
    s_dst = jnp.zeros((N_pad, 1), jnp.float32).at[:N, 0].set(s_dst_col[:, 0])

    # Layout plumbing (done once per layer, outside the kernel).
    h_bf = jnp.zeros((N_pad, D_pad), jnp.bfloat16).at[:N, :D].set(h.astype(jnp.bfloat16))
    adjt_i8 = jnp.zeros((N_pad, N_pad), jnp.int8).at[:N, :N].set(
        (jnp.transpose(adj) != 0).astype(jnp.int8))            # adjt[v, u] = edge u->v

    grid = (N_pad // TN, N_pad // TK)
    out = pl.pallas_call(
        _gat_layer_kernel,
        out_shape=jax.ShapeDtypeStruct((N_pad, D_pad), out_dtype),
        grid=grid,
        in_specs=[
            pl.BlockSpec((TN, 1), lambda i, k: (i, 0)),        # s_dst tile
            pl.BlockSpec((1, TK), lambda i, k: (0, k)),        # s_src block
            pl.BlockSpec((TN, TK), lambda i, k: (i, k)),       # adj^T block (int8 stream)
            pl.BlockSpec((TK, D_pad), lambda i, k: (k, 0)),    # h src block (bf16 stream)
        ],
        out_specs=pl.BlockSpec((TN, D_pad), lambda i, k: (i, 0)),
        scratch_shapes=[
            pltpu.VMEM((TN, 1), jnp.float32),                  # running max m
            pltpu.VMEM((TN, 1), jnp.float32),                  # running denom l
            pltpu.VMEM((TN, D_pad), jnp.float32),              # f32 accumulator
        ],
        compiler_params=pltpu.CompilerParams(
            dimension_semantics=("parallel", "arbitrary"),     # dst tiles parallel, src reduce
            vmem_limit_bytes=48 * 1024 * 1024,                 # safe on v5e/v6e/v7x (64 MiB)
        ),
    )(s_dst, s_src, adjt_i8, h_bf)
    return out[:N, :D]


def gat_forward(h, adj, attn_ws, *, tile_n=256, tile_k=512):
    """GAT.forward: stacked attention layers. num_heads == 1, so the per-layer
    torch.mean(h, dim=1) over heads is the identity."""
    n_layers = len(attn_ws)
    for li, attn_w in enumerate(attn_ws):
        # Intermediate layers emit bf16 (next layer re-casts anyway); final layer f32.
        out_dtype = jnp.float32 if li == n_layers - 1 else jnp.bfloat16
        h = gat_layer_forward(h, adj, attn_w, tile_n=tile_n, tile_k=tile_k,
                              out_dtype=out_dtype)
    return h


# ----------------------------- pure-JAX reference -----------------------------
def gat_layer_reference(h, adj, attn_w):
    N, D = h.shape
    s_src = h @ attn_w[:, :D].T          # [N, 1]
    s_dst = h @ attn_w[:, D:].T          # [N, 1]
    e = s_src + s_dst.T                  # e[u, v]
    e = jnp.where(e > 0, e, NEG_SLOPE * e)
    e_masked = jnp.where(adj > 0, e, -jnp.inf)
    e_max = jnp.max(e_masked, axis=0, keepdims=True)
    e_max = jnp.where(jnp.isfinite(e_max), e_max, 0.0)
    p = jnp.where(adj > 0, jnp.exp(e_masked - e_max), 0.0)
    denom = jnp.sum(p, axis=0, keepdims=True)
    denom = jnp.where(denom > 0, denom, 1.0)
    alpha = p / denom
    return alpha.T @ h


def gat_forward_reference(h, adj, attn_ws):
    for attn_w in attn_ws:
        h = gat_layer_reference(h, adj, attn_w)
    return h


if __name__ == "__main__":
    # GAT(latent_dim, num_layers, num_heads=1, src, dst) at small shapes.
    N, latent_dim, num_layers, num_edges = 256, 64, 2, 512

    key = jax.random.PRNGKey(0)
    k_h, k_src, k_dst, k_w = jax.random.split(key, 4)

    h = jax.random.normal(k_h, (N, latent_dim), dtype=jnp.float32)

    # create_graph(): random (src, dst) edge list -> bidirected + self loops,
    # materialised as a dense adjacency mask adj[u, v] = 1 iff edge u -> v.
    src = jax.random.randint(k_src, (num_edges,), 0, N)
    dst = jax.random.randint(k_dst, (num_edges,), 0, N)
    adj = jnp.zeros((N, N), jnp.float32).at[src, dst].set(1.0)
    adj = jnp.maximum(adj, adj.T)                               # dgl.to_bidirected
    adj = jnp.maximum(adj, jnp.eye(N, dtype=jnp.float32))       # dgl.add_self_loop

    # One attn_fc weight per layer (nn.Linear(2 * latent_dim, 1).weight).
    attn_ws = [0.1 * jax.random.normal(k, (1, 2 * latent_dim), dtype=jnp.float32)
               for k in jax.random.split(k_w, num_layers)]

    # tile_n=128, tile_k=128 -> grid=(2, 2): exercises both the parallel dst axis
    # and the online-softmax accumulation over source blocks.
    out = gat_forward(h, adj, attn_ws, tile_n=128, tile_k=128)
    out = jax.block_until_ready(out)

    ref = gat_forward_reference(h, adj, attn_ws)
    assert out.shape == (N, latent_dim)
    # MXU matmuls and intermediate layer outputs are bf16 (f32 accumulation), so
    # compare against the f32 reference with bf16-level tolerance.
    assert jnp.allclose(out, ref, atol=4e-2, rtol=4e-2), "Pallas kernel mismatch vs reference"

    print("KERNEL_OK")
</pallas_src>

<mosaic_0001>
module attributes {stable_mosaic.version = 11 : i64} {
  func.func @_gat_layer_kernel(%arg0: i32, %arg1: i32, %arg2: memref<128x1xf32, #tpu.memory_space<vmem>>, %arg3: memref<1x128xf32, #tpu.memory_space<vmem>>, %arg4: memref<128x128xi8, #tpu.memory_space<vmem>>, %arg5: memref<128x128xbf16, #tpu.memory_space<vmem>>, %arg6: memref<128x128xbf16, #tpu.memory_space<vmem>>, %arg7: memref<128x1xf32, #tpu.memory_space<vmem>>, %arg8: memref<128x1xf32, #tpu.memory_space<vmem>>, %arg9: memref<128x128xf32, #tpu.memory_space<vmem>>) attributes {dimension_semantics = [#tpu.dimension_semantics<parallel>, #tpu.dimension_semantics<arbitrary>], iteration_bounds = array<i64: 2, 2>, scalar_prefetch = 0 : i64, scratch_operands = 3 : i64, tpu.core_type = #tpu.core_type<tc>, window_params = [{transform_indices = @transform_0, window_bounds = array<i64: 128, 1>}, {transform_indices = @transform_1, window_bounds = array<i64: 1, 128>}, {transform_indices = @transform_2, window_bounds = array<i64: 128, 128>}, {transform_indices = @transform_3, window_bounds = array<i64: 128, 128>}, {transform_indices = @transform_4, window_bounds = array<i64: 128, 128>}]} {
    %c0_i32 = arith.constant 0 : i32
    %0 = arith.cmpi eq, %arg1, %c0_i32 : i32
    %1 = arith.extui %0 : i1 to i32
    %c0_i32_0 = arith.constant 0 : i32
    %2 = arith.cmpi ne, %1, %c0_i32_0 : i32
    scf.if %2 {
      %cst_27 = arith.constant -1.000000e+30 : f32
      %47 = vector.broadcast %cst_27 : f32 to vector<128x1xf32>
      %c0_28 = arith.constant 0 : index
      %c0_29 = arith.constant 0 : index
      %48 = vector.load %arg7[%c0_28, %c0_29] : memref<128x1xf32, #tpu.memory_space<vmem>>, vector<128x1xf32>
      tpu.vector_store %arg7[%c0_28, %c0_29], %47 {strides = array<i32>} : memref<128x1xf32, #tpu.memory_space<vmem>>, vector<128x1xf32>,
      %cst_30 = arith.constant 0.000000e+00 : f32
      %49 = vector.broadcast %cst_30 : f32 to vector<128x1xf32>
      %c0_31 = arith.constant 0 : index
      %c0_32 = arith.constant 0 : index
      %50 = vector.load %arg8[%c0_31, %c0_32] : memref<128x1xf32, #tpu.memory_space<vmem>>, vector<128x1xf32>
      tpu.vector_store %arg8[%c0_31, %c0_32], %49 {strides = array<i32>} : memref<128x1xf32, #tpu.memory_space<vmem>>, vector<128x1xf32>,
      %cst_33 = arith.constant 0.000000e+00 : f32
      %51 = vector.broadcast %cst_33 : f32 to vector<128x128xf32>
      %c0_34 = arith.constant 0 : index
      %c0_35 = arith.constant 0 : index
      %52 = vector.load %arg9[%c0_34, %c0_35] : memref<128x128xf32, #tpu.memory_space<vmem>>, vector<128x128xf32>
      tpu.vector_store %arg9[%c0_34, %c0_35], %51 {strides = array<i32>} : memref<128x128xf32, #tpu.memory_space<vmem>>, vector<128x128xf32>,
    } else {
    }
    %c0 = arith.constant 0 : index
    %c0_1 = arith.constant 0 : index
    %3 = vector.load %arg2[%c0, %c0_1] : memref<128x1xf32, #tpu.memory_space<vmem>>, vector<128x1xf32>
    %c0_2 = arith.constant 0 : index
    %c0_3 = arith.constant 0 : index
    %4 = vector.load %arg3[%c0_2, %c0_3] : memref<1x128xf32, #tpu.memory_space<vmem>>, vector<1x128xf32>
    %5 = vector.broadcast %3 : vector<128x1xf32> to vector<128x128xf32>
    %6 = vector.broadcast %4 : vector<1x128xf32> to vector<128x128xf32>
    %7 = arith.addf %5, %6 : vector<128x128xf32>
    %cst = arith.constant 0.00999999977 : f32
    %8 = vector.broadcast %cst : f32 to vector<128x128xf32>
    %9 = arith.mulf %8, %7 : vector<128x128xf32>
    %10 = arith.maximumf %7, %9 : vector<128x128xf32>
    %c0_4 = arith.constant 0 : index
    %c0_5 = arith.constant 0 : index
    %11 = vector.load %arg4[%c0_4, %c0_5] : memref<128x128xi8, #tpu.memory_space<vmem>>, vector<128x128xi8>
    %c0_i8 = arith.constant 0 : i8
    %12 = vector.broadcast %c0_i8 : i8 to vector<128x128xi8>
    %13 = arith.cmpi ne, %11, %12 : vector<128x128xi8>
    %cst_6 = arith.constant -1.000000e+30 : f32
    %14 = vector.broadcast %cst_6 : f32 to vector<128x128xf32>
    %15 = arith.select %13, %10, %14 : vector<128x128xi1>, vector<128x128xf32>
    %c0_7 = arith.constant 0 : index
    %c0_8 = arith.constant 0 : index
    %16 = vector.load %arg7[%c0_7, %c0_8] : memref<128x1xf32, #tpu.memory_space<vmem>>, vector<128x1xf32>
    %cst_9 = arith.constant dense<0xFF800000> : vector<128xf32>
    %17 = vector.multi_reduction <maximumf>, %15, %cst_9 [1] : vector<128x128xf32> to vector<128xf32>
    %18 = vector.shape_cast %17 : vector<128xf32> to vector<128x1xf32>
    %19 = arith.maximumf %16, %18 : vector<128x1xf32>
    %cst_10 = arith.constant -5.000000e+29 : f32
    %20 = vector.broadcast %cst_10 : f32 to vector<128x1xf32>
    %21 = arith.cmpf olt, %19, %20 : vector<128x1xf32>
    %cst_11 = arith.constant 0.000000e+00 : f32
    %22 = vector.broadcast %cst_11 : f32 to vector<128x1xf32>
    %23 = arith.select %21, %22, %19 : vector<128x1xi1>, vector<128x1xf32>
    %24 = arith.subf %16, %23 : vector<128x1xf32>
    %25 = math.exp %24 : vector<128x1xf32>
    %26 = vector.broadcast %23 : vector<128x1xf32> to vector<128x128xf32>
    %27 = arith.subf %15, %26 : vector<128x128xf32>
    %28 = math.exp %27 : vector<128x128xf32>
    %c0_12 = arith.constant 0 : index
    %c0_13 = arith.constant 0 : index
    %29 = vector.load %arg8[%c0_12, %c0_13] : memref<128x1xf32, #tpu.memory_space<vmem>>, vector<128x1xf32>
    %30 = arith.mulf %25, %29 : vector<128x1xf32>
    %cst_14 = arith.constant dense<0.000000e+00> : vector<128xf32>
    %31 = vector.multi_reduction <add>, %28, %cst_14 [1] : vector<128x128xf32> to vector<128xf32>
    %32 = vector.shape_cast %31 : vector<128xf32> to vector<128x1xf32>
    %33 = arith.addf %30, %32 : vector<128x1xf32>
    %c0_15 = arith.constant 0 : index
    %c0_16 = arith.constant 0 : index
    %34 = vector.load %arg8[%c0_15, %c0_16] : memref<128x1xf32, #tpu.memory_space<vmem>>, vector<128x1xf32>
    tpu.vector_store %arg8[%c0_15, %c0_16], %33 {strides = array<i32>} : memref<128x1xf32, #tpu.memory_space<vmem>>, vector<128x1xf32>,
    %c0_17 = arith.constant 0 : index
    %c0_18 = arith.constant 0 : index
    %35 = vector.load %arg9[%c0_17, %c0_18] : memref<128x128xf32, #tpu.memory_space<vmem>>, vector<128x128xf32>
    %36 = vector.broadcast %25 : vector<128x1xf32> to vector<128x128xf32>
    %37 = arith.mulf %36, %35 : vector<128x128xf32>
    %38 = arith.truncf %28 : vector<128x128xf32> to vector<128x128xbf16>
    %c0_19 = arith.constant 0 : index
    %c0_20 = arith.constant 0 : index
    %39 = vector.load %arg5[%c0_19, %c0_20] : memref<128x128xbf16, #tpu.memory_space<vmem>>, vector<128x128xbf16>
    %cst_21 = arith.constant dense<0.000000e+00> : vector<128x128xf32>
    %40 = tpu.matmul %38, %39, %cst_21 {dimension_numbers = #tpu.dot_dimension_numbers<[1], [0], [0], [1], [0, 0, 1, 1], [], []>} : vector<128x128xbf16>, vector<128x128xbf16>, vector<128x128xf32> -> vector<128x128xf32>
    %41 = arith.addf %37, %40 : vector<128x128xf32>
    %c0_22 = arith.constant 0 : index
    %c0_23 = arith.constant 0 : index
    %42 = vector.load %arg9[%c0_22, %c0_23] : memref<128x128xf32, #tpu.memory_space<vmem>>, vector<128x128xf32>
    tpu.vector_store %arg9[%c0_22, %c0_23], %41 {strides = array<i32>} : memref<128x128xf32, #tpu.memory_space<vmem>>, vector<128x128xf32>,
    %c0_24 = arith.constant 0 : index
    %c0_25 = arith.constant 0 : index
    %43 = vector.load %arg7[%c0_24, %c0_25] : memref<128x1xf32, #tpu.memory_space<vmem>>, vector<128x1xf32>
    tpu.vector_store %arg7[%c0_24, %c0_25], %19 {strides = array<i32>} : memref<128x1xf32, #tpu.memory_space<vmem>>, vector<128x1xf32>,
    %c1_i32 = arith.constant 1 : i32
    %44 = arith.cmpi eq, %arg1, %c1_i32 : i32
    %45 = arith.extui %44 : i1 to i32
    %c0_i32_26 = arith.constant 0 : i32
    %46 = arith.cmpi ne, %45, %c0_i32_26 : i32
    scf.if %46 {
      %c0_27 = arith.constant 0 : index
      %c0_28 = arith.constant 0 : index
      %47 = vector.load %arg8[%c0_27, %c0_28] : memref<128x1xf32, #tpu.memory_space<vmem>>, vector<128x1xf32>
      %cst_29 = arith.constant 0.000000e+00 : f32
      %48 = vector.broadcast %cst_29 : f32 to vector<128x1xf32>
      %49 = arith.cmpf ogt, %47, %48 : vector<128x1xf32>
      %cst_30 = arith.constant 1.000000e+00 : f32
      %50 = vector.broadcast %cst_30 : f32 to vector<128x1xf32>
      %51 = arith.select %49, %47, %50 : vector<128x1xi1>, vector<128x1xf32>
      %c0_31 = arith.constant 0 : index
      %c0_32 = arith.constant 0 : index
      %52 = vector.load %arg9[%c0_31, %c0_32] : memref<128x128xf32, #tpu.memory_space<vmem>>, vector<128x128xf32>
      %53 = tpu.reciprocal %51 {approx = true} : vector<128x1xf32> -> vector<128x1xf32>
      %54 = vector.broadcast %53 : vector<128x1xf32> to vector<128x128xf32>
      %55 = arith.mulf %52, %54 : vector<128x128xf32>
      %56 = arith.truncf %55 : vector<128x128xf32> to vector<128x128xbf16>
      %c0_33 = arith.constant 0 : index
      %c0_34 = arith.constant 0 : index
      %57 = vector.load %arg6[%c0_33, %c0_34] : memref<128x128xbf16, #tpu.memory_space<vmem>>, vector<128x128xbf16>
      tpu.vector_store %arg6[%c0_33, %c0_34], %56 {strides = array<i32>} : memref<128x128xbf16, #tpu.memory_space<vmem>>, vector<128x128xbf16>,
    } else {
    }
    return
  }
  func.func @transform_0(%arg0: i32, %arg1: i32) -> (i32, i32) {
    %c0_i32 = arith.constant 0 : i32
    %c0_i32_0 = arith.constant 0 : i32
    return %arg0, %c0_i32 : i32, i32
  }
  func.func @transform_1(%arg0: i32, %arg1: i32) -> (i32, i32) {
    %c0_i32 = arith.constant 0 : i32
    %c0_i32_0 = arith.constant 0 : i32
    return %c0_i32, %arg1 : i32, i32
  }
  func.func @transform_2(%arg0: i32, %arg1: i32) -> (i32, i32) {
    %c0_i32 = arith.constant 0 : i32
    return %arg0, %arg1 : i32, i32
  }
  func.func @transform_3(%arg0: i32, %arg1: i32) -> (i32, i32) {
    %c0_i32 = arith.constant 0 : i32
    %c0_i32_0 = arith.constant 0 : i32
    return %arg1, %c0_i32 : i32, i32
  }
  func.func @transform_4(%arg0: i32, %arg1: i32) -> (i32, i32) {
    %c0_i32 = arith.constant 0 : i32
    %c0_i32_0 = arith.constant 0 : i32
    return %arg0, %c0_i32 : i32, i32
  }
}

</mosaic_0001>

<bundles_post_ra>
// kernel: gat_layer_forward.1
= control target key start
LH: loop header
LB: loop body
LE: loop exit
PB: predicated region body
PF: predicated region fallthrough
CT: control target
= control target key end

     0   :  { %s2782_s0 = inlined_call_operand.vmem [shape: f32[256,1], index: 0, kind: input, shape index: {}]   ;;  %s2783_s1 = inlined_call_operand.vmem [shape: f32[1,256], index: 1, kind: input, shape index: {}]   ;;  %s2784_s2 = inlined_call_operand.vmem [shape: s8[256,256], index: 2, kind: input, shape index: {}]   ;;  %s2785_s3 = inlined_call_operand.vmem [shape: bf16[256,128], index: 3, kind: input, shape index: {}]   ;;  %s2786_s4 = inlined_call_operand.vmem [shape: bf16[256,128], index: 4, kind: output, shape index: {}]  }
   0x1   :  { %2787 = sst [smem:[#allocation6_spill]] %s2784_s2 }
   0x2   :  { %s2162_s15 = smov 0   ;;  %s2164_s16 = smov 0  }
   0x3   :  { %s2166_s17 = smov 0   ;;  %s2168_s18 = smov 0  }
   0x4   :  { %s2170_s19 = smov 0   ;;  %s2172_s20 = smov 0  }
   0x5   :  { %s2174_s21 = smov 0  }
   0x6 LB: > { %s23_s22 = sadd.s32 1, %s2123_s19  ;;  %s26_s23 = sadd.s32 1, %s2127_s20  ;;  %s2131_s21 = sphi %s2174_s21, %s14_s21   ;;  %s2127_s20 = sphi %s2172_s20, %s2820_s20   ;;  %s2123_s19 = sphi %s2170_s19, %s2819_s19   ;;  %s2119_s18 = sphi %s2168_s18, %s2818_s18   ;;  %s2115_s17 = sphi %s2166_s17, %s2817_s17   ;;  %s2111_s16 = sphi %s2164_s16, %s2816_s16   ;;  %s2107_s15 = sphi %s2162_s15, %s2815_s15  }
   0x7   : > { %p24_p0 = scmp.ge.s32.totalorder %s23_s22, 2  ;;  %p94_p1 = scmp.ne.s32.totalorder %s2111_s16, %s2107_s15 }
   0x8   : > { %p95_p2 = scmp.eq.s32.totalorder %s2131_s21, 0  ;;  %s87_s27 = sadd.s32 1, %s2111_s16 }
   0x9   : > { %s2822_s22 = smov (%p24_p0, %s23_s22), 0  ;;  %s2824_s23 = smov (!%p24_p0, %s26_s23), %s2127_s20 }
   0xa   : > { %p96_p3 = por %p95_p2, %p94_p1  ;;  %p28_p4 = scmp.ge.s32.totalorder %s2824_s23, 2 }
   0xb   : > { %s83_s24 = ssub.s32 %s2123_s19, %s2822_s22  ;;  %p1739_p6 = scmp.ge.s32.totalorder %s2131_s21, 4 }
   0xc   : > { %s2826_s23 = smov (%p28_p4, %s2824_s23), 0 }
   0xd   : > { %s82_s25 = ssub.s32 %s2127_s20, %s2826_s23  ;;  %172 = sbr.rel (%p1739_p6) target bundleno = 30 (0x1e), region = 16 }
   0xe   : > { %s84_s26 = sor.u32 %s83_s24, %s82_s25 }
   0xf   : > { %p85_p5 = scmp.eq.s32.totalorder %s84_s26, 0 }
  0x11   : > { %s2213_s28 = scalar_select %p85_p5, %s2111_s16, %s87_s27  }
  0x12   : > { %190 = sbr.rel (!%p96_p3) target bundleno = 30 (0x1e), region = 28  ;;  %s192_s29 = sand.u32 (%p96_p3), 1, %s2111_s16  }
  0x13   : > { %s1781_s30 = sshll.u32 (%p96_p3), %s2127_s20, 3  ;;  %s1740_s5 = sshll.u32 (%p96_p3), %s192_s29, 5 }
  0x14   : > { %s197_s6 = sadd.s32 (%p96_p3), %s2123_s19, %s1781_s30  ;;  %s2788_s2 = sld [smem:[#allocation6_spill]] (%p96_p3) }
  0x15   : > { %s1743_s7 = sshll.u32 (%p96_p3), %s197_s6, 3  ;;  %s194_s11 = scalar_lea.vmem (%p96_p3), [#allocation5], %s1740_s5 }
  0x1a   : > { %s199_s10 = scalar_lea.vmem %s2788_s2, %s1743_s7 }
  0x1b   : > { %v234_v0 = vld [vmem:[%s199_s10] sm:$0xff]  ;;  %v236_v1 = vld [vmem:[%s199_s10 + $0x10] sm:$0xff] }
  0x1c   : > { %v238_v2 = vld [vmem:[%s199_s10 + $0x20] sm:$0xff]  ;;  %235 = vst [vmem:[%s194_s11] sm:$0xff] %v234_v0  ;;  %237 = vst [vmem:[%s194_s11 + $0x8] sm:$0xff] %v236_v1  ;;  %v240_v3 = vld [vmem:[%s199_s10 + $0x30] sm:$0xff] }
  0x1d   : > { %239 = vst [vmem:[%s194_s11 + $0x10] sm:$0xff] %v238_v2  ;;  %241 = vst [vmem:[%s194_s11 + $0x18] sm:$0xff] %v240_v3 }
  0x1e PF: > { %p1744_p7 = scmp.ge.s32.totalorder %s2131_s21, 1  ;;  %p255_p8 = scmp.lt.s32.totalorder %s2131_s21, 5 }
  0x20   : > { %p256_p9 = pnand %p1744_p7, %p255_p8 }
  0x21   : > { %s262_s12 = sand.u32 (!%p256_p9), 1, %s2107_s15   ;;  %s1746_s13 = sshll.u32 (!%p256_p9), %s2119_s18, 4 }
  0x22   : > { %259 = sbr.rel (%p256_p9) target bundleno = 904 (0x388), region = 70  ;;  %s1745_s14 = sshll.u32 (!%p256_p9), %s262_s12, 5 }
  0x23   : > { %p301_p10 = scmp.lt.s32.totalorder (!%p256_p9), %s1746_s13, 31  ;;  %p306_p11 = scmp.lt.s32.totalorder (!%p256_p9), %s2115_s17, 1 }
  0x24   : > { %s1748_s26 = sshll.u32 (!%p256_p9), %s2115_s17, 4  ;;  %p1752_p13 = scmp.ne.s32.totalorder (!%p256_p9), %s2115_s17, 0 }
  0x25   : > { %p311_p12 = scmp.lt.s32.totalorder (!%p256_p9), %s1748_s26, 31 }
  0x27   : > { %s2828_s13 = smov (!%p301_p10, %s1746_s13), 31  ;;  %s2830_s26 = smov (!%p311_p12, %s1748_s26), 31 }
  0x28   : > { %s2228_s24 = scalar_select %p306_p11, %s2115_s17, 1 }
  0x29   : > { %s1747_s25 = sshll.u32 %s2828_s13, 3  ;;  %s1751_s15 = sshll.u32 %s2828_s13, 2 }
  0x2a   : > { %s2234_s30 = scalar_lea.vmem %s2782_s0, %s1747_s25  ;;  %s308_s7 = scalar_lea.vmem %s2783_s1, %s2228_s24 }
  0x2b   : > { %s2243_s9 = scalar_lea.vmem %s2786_s4, %s1751_s15  ;;  %s1749_s10 = sshll.u32 %s2830_s26, 2 }
  0x2c   : > { %s2248_s2 = scalar_lea.vmem %s2785_s3, %s1749_s10  ;;  %s2250_s25 = scalar_lea.vmem [#allocation5], %s1745_s14 }
  0x2d   : > { %328 = sbr.rel (%p1752_p13) target bundleno = 75 (0x4b), region = 78 }
  0x32   : > { %vm329_vm0 = vcmask 7168   ;;  %v2133_v4 = vmov -1e+30   ;;  %v2134_v5 = vmov 0.0  }
  0x33   : > { %330 = vst.msk [vmem:[#allocation2] sm:$0xff] %vm329_vm0, %v2133_v4  ;;  %331 = vst.msk [vmem:[#allocation2 + $0x8] sm:$0xff] %vm329_vm0, %v2133_v4 }
  0x34   : > { %332 = vst.msk [vmem:[#allocation2 + $0x10] sm:$0xff] %vm329_vm0, %v2133_v4  ;;  %333 = vst.msk [vmem:[#allocation2 + $0x18] sm:$0xff] %vm329_vm0, %v2133_v4 }
  0x35   : > { %334 = vst.msk [vmem:[#allocation2 + $0x20] sm:$0xff] %vm329_vm0, %v2133_v4  ;;  %335 = vst.msk [vmem:[#allocation2 + $0x28] sm:$0xff] %vm329_vm0, %v2133_v4 }
  0x36   : > { %336 = vst.msk [vmem:[#allocation2 + $0x30] sm:$0xff] %vm329_vm0, %v2133_v4  ;;  %337 = vst.msk [vmem:[#allocation2 + $0x38] sm:$0xff] %vm329_vm0, %v2133_v4 }
  0x37   : > { %338 = vst.msk [vmem:[#allocation2 + $0x40] sm:$0xff] %vm329_vm0, %v2133_v4  ;;  %339 = vst.msk [vmem:[#allocation2 + $0x48] sm:$0xff] %vm329_vm0, %v2133_v4 }
  0x38   : > { %340 = vst.msk [vmem:[#allocation2 + $0x50] sm:$0xff] %vm329_vm0, %v2133_v4  ;;  %341 = vst.msk [vmem:[#allocation2 + $0x58] sm:$0xff] %vm329_vm0, %v2133_v4 }
  0x39   : > { %342 = vst.msk [vmem:[#allocation2 + $0x60] sm:$0xff] %vm329_vm0, %v2133_v4  ;;  %343 = vst.msk [vmem:[#allocation2 + $0x68] sm:$0xff] %vm329_vm0, %v2133_v4 }
  0x3a   : > { %344 = vst.msk [vmem:[#allocation2 + $0x70] sm:$0xff] %vm329_vm0, %v2133_v4  ;;  %345 = vst.msk [vmem:[#allocation2 + $0x78] sm:$0xff] %vm329_vm0, %v2133_v4 }
  0x3b   : > { %346 = vst.msk [vmem:[#allocation3] sm:$0xff] %vm329_vm0, %v2134_v5  ;;  %347 = vst.msk [vmem:[#allocation3 + $0x8] sm:$0xff] %vm329_vm0, %v2134_v5 }
  0x3c   : > { %348 = vst.msk [vmem:[#allocation3 + $0x10] sm:$0xff] %vm329_vm0, %v2134_v5  ;;  %349 = vst.msk [vmem:[#allocation3 + $0x18] sm:$0xff] %vm329_vm0, %v2134_v5 }
  0x3d   : > { %350 = vst.msk [vmem:[#allocation3 + $0x20] sm:$0xff] %vm329_vm0, %v2134_v5  ;;  %351 = vst.msk [vmem:[#allocation3 + $0x28] sm:$0xff] %vm329_vm0, %v2134_v5 }
  0x3e   : > { %352 = vst.msk [vmem:[#allocation3 + $0x30] sm:$0xff] %vm329_vm0, %v2134_v5  ;;  %353 = vst.msk [vmem:[#allocation3 + $0x38] sm:$0xff] %vm329_vm0, %v2134_v5 }
  0x3f   : > { %354 = vst.msk [vmem:[#allocation3 + $0x40] sm:$0xff] %vm329_vm0, %v2134_v5  ;;  %355 = vst.msk [vmem:[#allocation3 + $0x48] sm:$0xff] %vm329_vm0, %v2134_v5 }
  0x40   : > { %356 = vst.msk [vmem:[#allocation3 + $0x50] sm:$0xff] %vm329_vm0, %v2134_v5  ;;  %357 = vst.msk [vmem:[#allocation3 + $0x58] sm:$0xff] %vm329_vm0, %v2134_v5 }
  0x41   : > { %358 = vst.msk [vmem:[#allocation3 + $0x60] sm:$0xff] %vm329_vm0, %v2134_v5  ;;  %359 = vst.msk [vmem:[#allocation3 + $0x68] sm:$0xff] %vm329_vm0, %v2134_v5 }
  0x42   : > { %360 = vst.msk [vmem:[#allocation3 + $0x70] sm:$0xff] %vm329_vm0, %v2134_v5  ;;  %361 = vst.msk [vmem:[#allocation3 + $0x78] sm:$0xff] %vm329_vm0, %v2134_v5 }
  0x43   : > { %362 = vst [vmem:[#allocation4 + $0x30] sm:$0xff] %v2134_v5  ;;  %363 = vst [vmem:[#allocation4] sm:$0xff] %v2134_v5 }
  0x44   : > { %364 = vst [vmem:[#allocation4 + $0x58] sm:$0xff] %v2134_v5  ;;  %365 = vst [vmem:[#allocation4 + $0x18] sm:$0xff] %v2134_v5 }
  0x45   : > { %366 = vst [vmem:[#allocation4 + $0x50] sm:$0xff] %v2134_v5  ;;  %367 = vst [vmem:[#allocation4 + $0x68] sm:$0xff] %v2134_v5 }
  0x46   : > { %368 = vst [vmem:[#allocation4 + $0x8] sm:$0xff] %v2134_v5  ;;  %369 = vst [vmem:[#allocation4 + $0x48] sm:$0xff] %v2134_v5 }
  0x47   : > { %370 = vst [vmem:[#allocation4 + $0x40] sm:$0xff] %v2134_v5  ;;  %371 = vst [vmem:[#allocation4 + $0x20] sm:$0xff] %v2134_v5 }
  0x48   : > { %372 = vst [vmem:[#allocation4 + $0x10] sm:$0xff] %v2134_v5  ;;  %373 = vst [vmem:[#allocation4 + $0x38] sm:$0xff] %v2134_v5 }
  0x49   : > { %374 = vst [vmem:[#allocation4 + $0x60] sm:$0xff] %v2134_v5  ;;  %375 = vst [vmem:[#allocation4 + $0x70] sm:$0xff] %v2134_v5 }
  0x4a   : > { %376 = vst [vmem:[#allocation4 + $0x78] sm:$0xff] %v2134_v5  ;;  %377 = vst [vmem:[#allocation4 + $0x28] sm:$0xff] %v2134_v5 }
  0x4b PF: > { %v386_v6 = vld [vmem:[%s2234_s30 + $0x40] sm:$0xff]  ;;  %v2135_v8 = vmov 0   ;;  %v387_v9 = vld [vmem:[%s2234_s30 + $0x48] sm:$0xff]  ;;  %v381_v11 = vld [vmem:[%s2234_s30 + $0x18] sm:$0xff]  ;;  %p1762_p0 = scmp.ne.s32.totalorder %s2115_s17, 1 }
  0x4c   : > { %v378_v7 = vld [vmem:[%s2234_s30] sm:$0xff]  ;;  %1970 = vset.pattern.permute.xlu1 %v2135_v8  ;;  %1969 = vset.pattern.permute.xlu0 %v2135_v8  ;;  %v379_v10 = vld [vmem:[%s2234_s30 + $0x8] sm:$0xff]  ;;  %v380_v12 = vld [vmem:[%s2234_s30 + $0x10] sm:$0xff] }
  0x4d   : > { %437 = vperm.xlu1 %1970, %v386_v6   ;;  %397 = vperm.xlu0 %1969, %v378_v7   ;;  %v389_v13 = vld [vmem:[%s2234_s30 + $0x58] sm:$0xff]  ;;  %v388_v14 = vld [vmem:[%s2234_s30 + $0x50] sm:$0xff]  ;;  %v383_v15 = vld [vmem:[%s2234_s30 + $0x28] sm:$0xff] }
  0x4e   : > { %v382_v16 = vld [vmem:[%s2234_s30 + $0x20] sm:$0xff]  ;;  %v391_v17 = vld [vmem:[%s2234_s30 + $0x68] sm:$0xff]  ;;  %v385_v19 = vld [vmem:[%s2234_s30 + $0x38] sm:$0xff] }
  0x4f   : > { %v390_v18 = vld [vmem:[%s2234_s30 + $0x60] sm:$0xff]  ;;  %v384_v20 = vld [vmem:[%s2234_s30 + $0x30] sm:$0xff]  ;;  %v393_v21 = vld [vmem:[%s2234_s30 + $0x78] sm:$0xff] }
  0x50   : > { %v392_v22 = vld [vmem:[%s2234_s30 + $0x70] sm:$0xff]  ;;  %v529_v23 = vld [vmem:[%s2250_s25] sm:$0xff]  ;;  %v530_v42 = vld [vmem:[%s2250_s25 + $0x8] sm:$0xff] }
  0x51   : > { %442 = vperm.xlu1 %1970, %v387_v9   ;;  %402 = vperm.xlu0 %1969, %v379_v10   ;;  %vm533_vm1 = vnez %v529_v23  ;;  %v531_v24 = vld [vmem:[%s2250_s25 + $0x10] sm:$0xff]  ;;  %vm534_vm5 = vnez %v530_v42  ;;  %v532_v53 = vld [vmem:[%s2250_s25 + $0x18] sm:$0xff]  ;;  %v2323_v62 = vld [vmem:[%s308_s7] ss:$0 sm:$0xff] }
  0x52   : > { %v537_v25 = vsel %vm533_vm1, 16843009, %v2135_v8  ;;  %vm535_vm2 = vnez %v531_v24  ;;  %v2311_v52 = vsel %vm534_vm5, 16843009, %v2135_v8  ;;  %vm536_vm10 = vnez %v532_v53 }
  0x53   : > { %v541_v26 = vunpack.c.0.s8 %v537_v25  ;;  %v539_v27 = vsel %vm535_vm2, 16843009, %v2135_v8  ;;  %v542_v28 = vunpack.c.1.s8 %v537_v25  ;;  %v543_v33 = vunpack.c.2.s8 %v537_v25 }
  0x54   : > { %v549_v29 = vunpack.c.0.s8 %v539_v27  ;;  %v550_v32 = vunpack.c.1.s8 %v539_v27  ;;  %v544_v35 = vunpack.c.3.s8 %v537_v25  ;;  %v551_v40 = vunpack.c.2.s8 %v539_v27 }
  0x55   : > { %412 = vperm.xlu1 %1970, %v381_v11   ;;  %407 = vperm.xlu0 %1969, %v380_v12   ;;  %v557_v30 = vpack.c.b16 %v541_v26, %v541_v26  ;;  %v559_v31 = vpack.c.b16 %v542_v28, %v542_v28  ;;  %v561_v39 = vpack.c.b16 %v543_v33, %v543_v33  ;;  %v552_v41 = vunpack.c.3.s8 %v539_v27 }
  0x56   : > { %v573_v34 = vpack.c.b16 %v549_v29, %v549_v29  ;;  %v575_v38 = vpack.c.b16 %v550_v32, %v550_v32  ;;  %v563_v44 = vpack.c.b16 %v544_v35, %v544_v35  ;;  %v577_v47 = vpack.c.b16 %v551_v40, %v551_v40 }
  0x57   : > { %v558_v36 = vpack.c.b8 %v557_v30, %v557_v30  ;;  %v560_v37 = vpack.c.b8 %v559_v31, %v559_v31  ;;  %v562_v46 = vpack.c.b8 %v561_v39, %v561_v39  ;;  %v579_v48 = vpack.c.b16 %v552_v41, %v552_v41 }
  0x58   : > { %v574_v43 = vpack.c.b8 %v573_v34, %v573_v34  ;;  %v576_v45 = vpack.c.b8 %v575_v38, %v575_v38  ;;  %v564_v51 = vpack.c.b8 %v563_v44, %v563_v44  ;;  %v578_v54 = vpack.c.b8 %v577_v47, %v577_v47 }
  0x59   : > { %452 = vperm.xlu1 %1970, %v389_v13   ;;  %447 = vperm.xlu0 %1969, %v388_v14   ;;  %vm589_vm3 = vnez %v558_v36  ;;  %vm590_vm4 = vnez %v560_v37  ;;  %vm591_vm8 = vnez %v562_v46  ;;  %v580_v58 = vpack.c.b8 %v579_v48, %v579_v48 }
  0x5a   : > { %v605_v49 = vsel %vm589_vm3, 16843009, %v2135_v8  ;;  %vm597_vm6 = vnez %v574_v43  ;;  %v606_v50 = vsel %vm590_vm4, 16843009, %v2135_v8  ;;  %vm598_vm7 = vnez %v576_v45 }
  0x5b   : > { %v621_v55 = vunpack.c.0.s8 %v605_v49  ;;  %v613_v56 = vsel %vm597_vm6, 16843009, %v2135_v8  ;;  %v622_v57 = vunpack.c.0.s8 %v606_v50  ;;  %v614_v59 = vsel %vm598_vm7, 16843009, %v2135_v8 }
  0x5c   : > { %vm592_vm9 = vnez %v564_v51  ;;  %v545_v60 = vunpack.c.0.s8 %v2311_v52  ;;  %v546_v61 = vunpack.c.1.s8 %v2311_v52  ;;  %v629_v63 = vunpack.c.0.s8 %v613_v56 }
  0x5d   : > { %422 = vperm.xlu1 %1970, %v383_v15   ;;  %417 = vperm.xlu0 %1969, %v382_v16   ;;  %v607_v0 = vsel %vm591_vm8, 16843009, %v2135_v8  ;;  %vm599_vm11 = vnez %v578_v54  ;;  %vm2326_vm12 = vcmp.ne.s32.totalorder %v621_v55, 0  ;;  %v630_v2 = vunpack.c.0.s8 %v614_v59 }
  0x5e   : > { %v608_v3 = vsel %vm592_vm9, 16843009, %v2135_v8  ;;  %v2332_v4 = vsel %vm536_vm10, 16843009, %v2135_v8  ;;  %vm2334_vm13 = vcmp.ne.s32.totalorder %v622_v57, 0  ;;  %vm600_vm14 = vnez %v580_v58 }
  0x5f   : > { %v565_v9 = vpack.c.b16 %v545_v60, %v545_v60  ;;  %v547_v10 = vunpack.c.2.s8 %v2311_v52  ;;  %v615_v13 = vsel %vm599_vm11, 16843009, %v2135_v8  ;;  %v567_v14 = vpack.c.b16 %v546_v61, %v546_v61 }
  0x60   : > { %vm2342_vm15 = vcmp.ne.s32.totalorder %v629_v63, 0  ;;  %v623_v16 = vunpack.c.0.s8 %v607_v0  ;;  %vm2347_vm0 = vcmp.ne.s32.totalorder %v630_v2, 0  ;;  %v554_v23 = vunpack.c.1.s8 %v2332_v4 }
  0x61   : > { %462 = vperm.xlu1 %1970, %v391_v17   ;;  %457 = vperm.xlu0 %1969, %v390_v18   ;;  %v624_v17 = vunpack.c.0.s8 %v608_v3  ;;  %v553_v18 = vunpack.c.0.s8 %v2332_v4  ;;  %v631_v26 = vunpack.c.0.s8 %v615_v13  ;;  %v566_v27 = vpack.c.b8 %v565_v9, %v565_v9 }
  0x62   : > { %v569_v28 = vpack.c.b16 %v547_v10, %v547_v10  ;;  %v548_v29 = vunpack.c.3.s8 %v2311_v52  ;;  %v568_v33 = vpack.c.b8 %v567_v14, %v567_v14  ;;  %vm2356_vm1 = vcmp.ne.s32.totalorder %v623_v16, 0 }
  0x63   : > { %v581_v37 = vpack.c.b16 %v553_v18, %v553_v18  ;;  %vm2364_vm2 = vcmp.ne.s32.totalorder %v624_v17, 0  ;;  %v583_v42 = vpack.c.b16 %v554_v23, %v554_v23  ;;  %vm2369_vm3 = vcmp.ne.s32.totalorder %v631_v26, 0 }
  0x64   : > { %vm2373_vm4 = vnez %v566_v27  ;;  %v570_v47 = vpack.c.b8 %v569_v28, %v569_v28  ;;  %v571_v48 = vpack.c.b16 %v548_v29, %v548_v29  ;;  %vm594_vm5 = vnez %v568_v33 }
  0x65   : > { %432 = vperm.xlu1 %1970, %v385_v19   ;;  %427 = vperm.xlu0 %1969, %v384_v20   ;;  %v582_v54 = vpack.c.b8 %v581_v37, %v581_v37  ;;  %v555_v55 = vunpack.c.2.s8 %v2332_v4  ;;  %v584_v60 = vpack.c.b8 %v583_v42, %v583_v42  ;;  %v609_v0 = vsel %vm2373_vm4, 16843009, %v2135_v8 }
  0x66   : > { %v610_v1 = vsel %vm594_vm5, 16843009, %v2135_v8  ;;  %v572_v2 = vpack.c.b8 %v571_v48, %v571_v48  ;;  %v556_v3 = vunpack.c.3.s8 %v2332_v4  ;;  %vm595_vm7 = vnez %v570_v47 }
  0x67   : > { %vm2405_vm8 = vnez %v582_v54  ;;  %vm602_vm9 = vnez %v584_v60  ;;  %v625_v17 = vunpack.c.0.s8 %v609_v0  ;;  %v626_v18 = vunpack.c.0.s8 %v610_v1  ;;  %v2530_v60 = vld [vmem:[#allocation2 + $0x58] sm:$0xff] }
  0x68   : > { %v618_v27 = vsel %vm602_vm9, 16843009, %v2135_v8  ;;  %vm1021_vm5 = vcmask 7168  }
  0x69   : > { %472 = vperm.xlu1 %1970, %v393_v21   ;;  %467 = vperm.xlu0 %1969, %v392_v22   ;;  %v616_v22 = vsel %vm600_vm14, 16843009, %v2135_v8  ;;  %vm641_vm10 = vcmp.ne.s32.totalorder %v625_v17, 0  ;;  %vm2432_vm11 = vcmp.ne.s32.totalorder %v626_v18, 0  ;;  %v634_v41 = vunpack.c.0.s8 %v618_v27  ;;  %v2494_v27 = vld [vmem:[#allocation2 + $0x40] sm:$0xff] }
  0x6a   : > { %v632_v36 = vunpack.c.0.s8 %v616_v22 }
  0x6c   : > { %vm2388_vm6 = vcmp.ne.s32.totalorder %v632_v36, 0  ;;  %v2505_v36 = vld [vmem:[#allocation2 + $0x48] sm:$0xff] }
  0xc8   : > { %v438_v5 = vpop.permute.xlu1 %437  ;;  %v398_v6 = vpop.permute.xlu0 %397 }
  0xc9   : > { %v489_v11 = vadd.f32 %v2323_v62, %v438_v5  ;;  %v481_v12 = vadd.f32 %v2323_v62, %v398_v6 }
  0xcb   : > { %v505_v19 = vmul.f32 0.01, %v489_v11  ;;  %v497_v20 = vmul.f32 0.01, %v481_v12 }
  0xcc   : > { %v443_v24 = vpop.permute.xlu1 %442  ;;  %v403_v25 = vpop.permute.xlu0 %402 }
  0xcd   : > { %v490_v30 = vadd.f32 %v2323_v62, %v443_v24  ;;  %v482_v31 = vadd.f32 %v2323_v62, %v403_v25  ;;  %v513_v32 = vmax.f32 %v481_v12, %v497_v20  ;;  %v521_v34 = vmax.f32 %v489_v11, %v505_v19 }
  0xce   : > { %v585_v12 = vpack.c.b16 %v555_v55, %v555_v55  ;;  %v611_v19 = vsel %vm595_vm7, 16843009, %v2135_v8  ;;  %v587_v20 = vpack.c.b16 %v556_v3, %v556_v3  ;;  %v617_v24 = vsel %vm2405_vm8, 16843009, %v2135_v8 }
  0xcf   : > { %v506_v38 = vmul.f32 0.01, %v490_v30  ;;  %v498_v39 = vmul.f32 0.01, %v482_v31  ;;  %v2362_v40 = vsel %vm2326_vm12, %v513_v32, -1e+30  ;;  %v633_v35 = vunpack.c.0.s8 %v617_v24 }
  0xd0   : > { %v413_v43 = vpop.permute.xlu1 %412  ;;  %685 = vmax.xlane.f32.xlu0 %v2362_v40  ;;  %v408_v44 = vpop.permute.xlu0 %407  ;;  %v2381_v52 = vsel %vm2342_vm15, %v521_v34, -1e+30  ;;  %v586_v28 = vpack.c.b8 %v585_v12, %v585_v12  ;;  %vm2436_vm12 = vnez %v572_v2  ;;  %vm2460_vm15 = vcmp.ne.s32.totalorder %v634_v41, 0 }
  0xd1   : > { %v484_v49 = vadd.f32 %v2323_v62, %v413_v43  ;;  %v483_v50 = vadd.f32 %v2323_v62, %v408_v44  ;;  %v514_v51 = vmax.f32 %v482_v31, %v498_v39  ;;  %v522_v53 = vmax.f32 %v490_v30, %v506_v38 }
  0xd2   : > { %v588_v44 = vpack.c.b8 %v587_v20, %v587_v20  ;;  %vm649_vm14 = vcmp.ne.s32.totalorder %v633_v35, 0  ;;  %v2503_v35 = vld [vmem:[#allocation2 + $0x10] sm:$0xff] }
  0xd3   : > { %v500_v56 = vmul.f32 0.01, %v484_v49  ;;  %v499_v57 = vmul.f32 0.01, %v483_v50  ;;  %v2386_v58 = vsel %vm2334_vm13, %v514_v51, -1e+30  ;;  %vm603_vm13 = vnez %v586_v28 }
  0xd4   : > { %v453_v61 = vpop.permute.xlu1 %452  ;;  %701 = vmax.xlane.f32.xlu0 %v2381_v52  ;;  %687 = vmax.xlane.f32.xlu1 %v2386_v58  ;;  %v448_v63 = vpop.permute.xlu0 %447  ;;  %v2403_v9 = vsel %vm2347_vm0, %v522_v53, -1e+30  ;;  %v612_v51 = vsel %vm2436_vm12, 16843009, %v2135_v8  ;;  %vm604_vm0 = vnez %v588_v44 }
  0xd5   : > { %v492_v5 = vadd.f32 %v2323_v62, %v453_v61  ;;  %v491_v6 = vadd.f32 %v2323_v62, %v448_v63  ;;  %v515_v7 = vmax.f32 %v483_v50, %v499_v57  ;;  %v516_v10 = vmax.f32 %v484_v49, %v500_v56 }
  0xd6   : > { %v627_v50 = vunpack.c.0.s8 %v611_v19  ;;  %v619_v56 = vsel %vm603_vm13, 16843009, %v2135_v8  ;;  %v628_v3 = vunpack.c.0.s8 %v612_v51  ;;  %v620_v11 = vsel %vm604_vm0, 16843009, %v2135_v8 }
  0xd7   : > { %v508_v13 = vmul.f32 0.01, %v492_v5  ;;  %v507_v14 = vmul.f32 0.01, %v491_v6  ;;  %v2411_v4 = vsel %vm2356_vm1, %v515_v7, -1e+30 }
  0xd8   : > { %v423_v15 = vpop.permute.xlu1 %422  ;;  %703 = vmax.xlane.f32.xlu0 %v2403_v9  ;;  %689 = vmax.xlane.f32.xlu1 %v2411_v4  ;;  %v418_v16 = vpop.permute.xlu0 %417  ;;  %v2423_v25 = vsel %vm2364_vm2, %v516_v10, -1e+30  ;;  %vm643_vm1 = vcmp.ne.s32.totalorder %v627_v50, 0  ;;  %vm644_vm2 = vcmp.ne.s32.totalorder %v628_v3, 0 }
  0xd9   : > { %v486_v21 = vadd.f32 %v2323_v62, %v423_v15  ;;  %v485_v22 = vadd.f32 %v2323_v62, %v418_v16  ;;  %v523_v23 = vmax.f32 %v491_v6, %v507_v14  ;;  %v524_v26 = vmax.f32 %v492_v5, %v508_v13 }
  0xda   : > { %v635_v5 = vunpack.c.0.s8 %v619_v56 }
  0xdb   : > { %v502_v29 = vmul.f32 0.01, %v486_v21  ;;  %v501_v30 = vmul.f32 0.01, %v485_v22  ;;  %v2428_v31 = vsel %vm2369_vm3, %v523_v23, -1e+30 }
  0xdc   : > { %v463_v32 = vpop.permute.xlu1 %462  ;;  %691 = vmax.xlane.f32.xlu0 %v2423_v25  ;;  %705 = vmax.xlane.f32.xlu1 %v2428_v31  ;;  %v458_v33 = vpop.permute.xlu0 %457  ;;  %v2444_v42 = vsel %vm2388_vm6, %v524_v26, -1e+30  ;;  %vm651_vm3 = vcmp.ne.s32.totalorder %v635_v5, 0  ;;  %v1971_v23 = vld [vmem:[%s2248_s2 + $0x38] sm:$0xff]   ;;  %v2492_v26 = vld [vmem:[#allocation2 + $0x8] sm:$0xff] }
  0xdd   : > { %v494_v37 = vadd.f32 %v2323_v62, %v463_v32  ;;  %v493_v38 = vadd.f32 %v2323_v62, %v458_v33  ;;  %v517_v39 = vmax.f32 %v485_v22, %v501_v30  ;;  %v518_v43 = vmax.f32 %v486_v21, %v502_v29  ;;  %v2488_v21 = vld [vmem:[#allocation2] sm:$0xff]  ;;  %1861 = vmatprep.subr.bf16.mxu0 %v1971_v23  ;;  %v1972_v32 = vld [vmem:[%s2248_s2 + $0x30] sm:$0xff]   ;;  %v1975_v5 = vld [vmem:[%s2248_s2 + $0x18] sm:$0xff]  }
  0xde   : > { %1893 = vmatprep.subr.bf16.mxu1 %v1971_v23  ;;  %1862 = vmatpush3.bf16.msra.mxu0 %v1971_v23 }
  0xdf   : > { %v510_v45 = vmul.f32 0.01, %v494_v37  ;;  %v509_v46 = vmul.f32 0.01, %v493_v38  ;;  %v2446_v47 = vsel %vm641_vm10, %v517_v39, -1e+30  ;;  %1901 = vmatpush3.bf16.msra.mxu1 %v1971_v23  ;;  %1863 = vmatprep.subr.bf16.mxu0 %v1972_v32 }
  0xe0   : > { %v433_v48 = vpop.permute.xlu1 %432  ;;  %707 = vmax.xlane.f32.xlu0 %v2444_v42  ;;  %693 = vmax.xlane.f32.xlu1 %v2446_v47  ;;  %v428_v49 = vpop.permute.xlu0 %427  ;;  %v2458_v57 = vsel %vm2432_vm11, %v518_v43, -1e+30  ;;  %v1973_v43 = vld [vmem:[%s2248_s2 + $0x28] sm:$0xff]  }
  0xe1   : > { %v488_v53 = vadd.f32 %v2323_v62, %v433_v48  ;;  %v487_v54 = vadd.f32 %v2323_v62, %v428_v49  ;;  %v525_v55 = vmax.f32 %v493_v38, %v509_v46  ;;  %v526_v59 = vmax.f32 %v494_v37, %v510_v45  ;;  %1894 = vmatprep.subr.bf16.mxu1 %v1972_v32  ;;  %v2515_v46 = vld [vmem:[#allocation2 + $0x50] sm:$0xff]  ;;  %v2517_v48 = vld [vmem:[#allocation2 + $0x18] sm:$0xff] }
  0xe2   : > { %1864 = vmatpush3.bf16.msra.mxu0 %v1972_v32 }
  0xe3   : > { %v504_v61 = vmul.f32 0.01, %v488_v53  ;;  %v503_v63 = vmul.f32 0.01, %v487_v54  ;;  %v2464_v0 = vsel %vm649_vm14, %v525_v55, -1e+30  ;;  %1902 = vmatpush3.bf16.msra.mxu1 %v1972_v32  ;;  %1865 = vmatprep.subr.bf16.mxu0 %v1973_v43 }
  0xe4   : > { %v473_v1 = vpop.permute.xlu1 %472  ;;  %695 = vmax.xlane.f32.xlu0 %v2458_v57  ;;  %709 = vmax.xlane.f32.xlu1 %v2464_v0  ;;  %v468_v2 = vpop.permute.xlu0 %467  ;;  %v2473_v12 = vsel %vm2460_vm15, %v526_v59, -1e+30  ;;  %v673_v59 = vld [vmem:[#allocation2 + $0x20] sm:$0xff] }
  0xe5   : > { %v496_v6 = vadd.f32 %v2323_v62, %v473_v1  ;;  %v495_v7 = vadd.f32 %v2323_v62, %v468_v2  ;;  %v519_v10 = vmax.f32 %v487_v54, %v503_v63  ;;  %v520_v16 = vmax.f32 %v488_v53, %v504_v61  ;;  %1895 = vmatprep.subr.bf16.mxu1 %v1973_v43  ;;  %v1974_v54 = vld [vmem:[%s2248_s2 + $0x20] sm:$0xff]  }
  0xe6   : > { %v636_v62 = vunpack.c.0.s8 %v620_v11  ;;  %1866 = vmatpush3.bf16.msra.mxu0 %v1973_v43  ;;  %v2545_v11 = vld [vmem:[#allocation2 + $0x60] sm:$0xff] }
  0xe7   : > { %v512_v13 = vmul.f32 0.01, %v496_v6  ;;  %v511_v14 = vmul.f32 0.01, %v495_v7  ;;  %v2475_v15 = vsel %vm643_vm1, %v519_v10, -1e+30  ;;  %1903 = vmatpush3.bf16.msra.mxu1 %v1973_v43  ;;  %1867 = vmatprep.subr.bf16.mxu0 %v1974_v54 }
  0xe8   : > { %711 = vmax.xlane.f32.xlu0 %v2473_v12  ;;  %697 = vmax.xlane.f32.xlu1 %v2475_v15  ;;  %v2479_v18 = vsel %vm644_vm2, %v520_v16, -1e+30  ;;  %vm652_vm4 = vcmp.ne.s32.totalorder %v636_v62, 0 }
  0xe9   : > { %v527_v17 = vmax.f32 %v495_v7, %v511_v14  ;;  %v528_v19 = vmax.f32 %v496_v6, %v512_v13  ;;  %1896 = vmatprep.subr.bf16.mxu1 %v1974_v54  ;;  %v2547_v13 = vld [vmem:[#allocation2 + $0x28] sm:$0xff] }
  0xea   : > { %1868 = vmatpush3.bf16.msra.mxu0 %v1974_v54 }
  0xeb   : > { %v2481_v8 = vsel %vm651_vm3, %v527_v17, -1e+30  ;;  %v2485_v20 = vsel %vm652_vm4, %v528_v19, -1e+30  ;;  %1904 = vmatpush3.bf16.msra.mxu1 %v1974_v54  ;;  %1869 = vmatprep.subr.bf16.mxu0 %v1975_v5 }
  0xec   : > { %699 = vmax.xlane.f32.xlu0 %v2479_v18  ;;  %713 = vmax.xlane.f32.xlu1 %v2481_v8 }
  0xed   : > { %1897 = vmatprep.subr.bf16.mxu1 %v1975_v5 }
  0xee   : > { %1870 = vmatpush3.bf16.msra.mxu0 %v1975_v5 }
  0xef   : > { %1905 = vmatpush3.bf16.msra.mxu1 %v1975_v5  ;;  %v2581_v5 = vld [vmem:[#allocation2 + $0x78] sm:$0xff] }
  0xf0   : > { %715 = vmax.xlane.f32.xlu0 %v2485_v20 }
 0x159   : > { %v686_v22 = vpop.xlane.xlu0 %685 }
 0x15a   : > { %v717_v24 = vmax.f32 %v2488_v21, %v686_v22 }
 0x15c   : > { %1351 = vst.msk [vmem:[#allocation2] sm:$0xff] %vm1021_vm5, %v717_v24  ;;  %vm733_vm6 = vcmp.lt.f32.partialorder %v717_v24, -5e+29 }
 0x15d   : > { %v688_v28 = vpop.xlane.xlu1 %687  ;;  %v702_v29 = vpop.xlane.xlu0 %701  ;;  %v2497_v30 = vsel %vm733_vm6, 0.0, %v717_v24 }
 0x15e   : > { %v718_v33 = vmax.f32 %v2492_v26, %v688_v28  ;;  %v725_v34 = vmax.f32 %v2494_v27, %v702_v29  ;;  %815 = vperm.xlu1 %1970, %v2497_v30   ;;  %v765_v10 = vsub.f32 %v2488_v21, %v2497_v30  ;;  %v1976_v21 = vld [vmem:[%s2248_s2 + $0x10] sm:$0xff]   ;;  %v2559_v30 = vld [vmem:[#allocation2 + $0x68] sm:$0xff] }
 0x15f   : > { %v675_v29 = vld [vmem:[#allocation2 + $0x30] sm:$0xff]  ;;  %1871 = vmatprep.subr.bf16.mxu0 %v1976_v21  ;;  %1898 = vmatprep.subr.bf16.mxu1 %v1976_v21 }
 0x160   : > { %1352 = vst.msk [vmem:[#allocation2 + $0x8] sm:$0xff] %vm1021_vm5, %v718_v33  ;;  %1359 = vst.msk [vmem:[#allocation2 + $0x40] sm:$0xff] %vm1021_vm5, %v725_v34  ;;  %vm734_vm7 = vcmp.lt.f32.partialorder %v718_v33, -5e+29  ;;  %vm741_vm8 = vcmp.lt.f32.partialorder %v725_v34, -5e+29  ;;  %1872 = vmatpush3.bf16.msra.mxu0 %v1976_v21  ;;  %1906 = vmatpush3.bf16.msra.mxu1 %v1976_v21 }
 0x161   : > { %v690_v37 = vpop.xlane.xlu1 %689  ;;  %v704_v38 = vpop.xlane.xlu0 %703  ;;  %v750_v39 = vsel %vm734_vm7, 0.0, %v718_v33  ;;  %v2509_v41 = vsel %vm741_vm8, 0.0, %v725_v34 }
 0x162   : > { %v719_v44 = vmax.f32 %v2503_v35, %v690_v37  ;;  %v726_v45 = vmax.f32 %v2505_v36, %v704_v38  ;;  %820 = vperm.xlu0 %1969, %v750_v39   ;;  %855 = vperm.xlu1 %1970, %v2509_v41   ;;  %v766_v61 = vsub.f32 %v2492_v26, %v750_v39  ;;  %v781_v26 = vmul.f32 1.442695, %v765_v10  ;;  %v1977_v38 = vld [vmem:[%s2248_s2 + $0x8] sm:$0xff]  }
 0x163   : > { %1873 = vmatprep.subr.bf16.mxu0 %v1977_v38  ;;  %1899 = vmatprep.subr.bf16.mxu1 %v1977_v38 }
 0x164   : > { %1353 = vst.msk [vmem:[#allocation2 + $0x10] sm:$0xff] %vm1021_vm5, %v719_v44  ;;  %1360 = vst.msk [vmem:[#allocation2 + $0x48] sm:$0xff] %vm1021_vm5, %v726_v45  ;;  %vm735_vm9 = vcmp.lt.f32.partialorder %v719_v44, -5e+29  ;;  %vm742_vm10 = vcmp.lt.f32.partialorder %v726_v45, -5e+29  ;;  %1874 = vmatpush3.bf16.msra.mxu0 %v1977_v38  ;;  %1907 = vmatpush3.bf16.msra.mxu1 %v1977_v38 }
 0x165   : > { %v706_v49 = vpop.xlane.xlu1 %705  ;;  %v692_v50 = vpop.xlane.xlu0 %691  ;;  %v2521_v51 = vsel %vm735_vm9, 0.0, %v719_v44  ;;  %v2523_v53 = vsel %vm742_vm10, 0.0, %v726_v45  ;;  %v783_v14 = vmul.f32 1.442695, %v766_v61 }
 0x166   : > { %v727_v55 = vmax.f32 %v2515_v46, %v706_v49  ;;  %v720_v56 = vmax.f32 %v2517_v48, %v692_v50  ;;  %825 = vperm.xlu0 %1969, %v2521_v51   ;;  %860 = vperm.xlu1 %1970, %v2523_v53   ;;  %v767_v28 = vsub.f32 %v2503_v35, %v2521_v51  ;;  %v2570_v49 = vld [vmem:[#allocation2 + $0x70] sm:$0xff]  ;;  %v676_v50 = vld [vmem:[#allocation2 + $0x38] sm:$0xff] }
 0x167   : > { %1979 = vpow2.f32 %v783_v14  ;;  %v773_v51 = vsub.f32 %v2494_v27, %v2509_v41 }
 0x168   : > { %1361 = vst.msk [vmem:[#allocation2 + $0x50] sm:$0xff] %vm1021_vm5, %v727_v55  ;;  %1354 = vst.msk [vmem:[#allocation2 + $0x18] sm:$0xff] %vm1021_vm5, %v720_v56  ;;  %vm743_vm11 = vcmp.lt.f32.partialorder %v727_v55, -5e+29  ;;  %vm736_vm12 = vcmp.lt.f32.partialorder %v720_v56, -5e+29  ;;  %1981 = vpow2.f32 %v781_v26 }
 0x169   : > { %v694_v63 = vpop.xlane.xlu1 %693  ;;  %v708_v1 = vpop.xlane.xlu0 %707  ;;  %v2535_v2 = vsel %vm743_vm11, 0.0, %v727_v55  ;;  %v2537_v3 = vsel %vm736_vm12, 0.0, %v720_v56  ;;  %v785_v44 = vmul.f32 1.442695, %v767_v28  ;;  %v774_v28 = vsub.f32 %v2505_v36, %v2523_v53 }
 0x16a   : > { %v721_v6 = vmax.f32 %v673_v59, %v694_v63  ;;  %v728_v7 = vmax.f32 %v2530_v60, %v708_v1  ;;  %865 = vperm.xlu0 %1969, %v2535_v2   ;;  %830 = vperm.xlu1 %1970, %v2537_v3   ;;  %v768_v45 = vsub.f32 %v2517_v48, %v2537_v3 }
 0x16c   : > { %1355 = vst.msk [vmem:[#allocation2 + $0x20] sm:$0xff] %vm1021_vm5, %v721_v6  ;;  %1362 = vst.msk [vmem:[#allocation2 + $0x58] sm:$0xff] %vm1021_vm5, %v728_v7  ;;  %vm737_vm13 = vcmp.lt.f32.partialorder %v721_v6, -5e+29  ;;  %vm744_vm14 = vcmp.lt.f32.partialorder %v728_v7, -5e+29 }
 0x16d   : > { %v710_v16 = vpop.xlane.xlu1 %709  ;;  %v696_v62 = vpop.xlane.xlu0 %695  ;;  %v753_v17 = vsel %vm737_vm13, 0.0, %v721_v6  ;;  %v2551_v19 = vsel %vm744_vm14, 0.0, %v728_v7  ;;  %v787_v3 = vmul.f32 1.442695, %v768_v45  ;;  %v797_v6 = vmul.f32 1.442695, %v773_v51 }
 0x16e   : > { %v729_v22 = vmax.f32 %v2545_v11, %v710_v16  ;;  %v722_v23 = vmax.f32 %v2547_v13, %v696_v62  ;;  %835 = vperm.xlu0 %1969, %v753_v17   ;;  %v769_v24 = vsub.f32 %v673_v59, %v753_v17  ;;  %870 = vperm.xlu1 %1970, %v2551_v19   ;;  %v1978_v59 = vld [vmem:[%s2248_s2] sm:$0xff]  }
 0x16f   : > { %1875 = vmatprep.subr.bf16.mxu0 %v1978_v59  ;;  %1900 = vmatprep.subr.bf16.mxu1 %v1978_v59  ;;  %v775_v16 = vsub.f32 %v2515_v46, %v2535_v2 }
 0x170   : > { %1363 = vst.msk [vmem:[#allocation2 + $0x60] sm:$0xff] %vm1021_vm5, %v729_v22  ;;  %1356 = vst.msk [vmem:[#allocation2 + $0x28] sm:$0xff] %vm1021_vm5, %v722_v23  ;;  %v789_v32 = vmul.f32 1.442695, %v769_v24  ;;  %vm745_vm15 = vcmp.lt.f32.partialorder %v729_v22, -5e+29  ;;  %1876 = vmatpush3.bf16.msra.mxu0 %v1978_v59  ;;  %1908 = vmatpush3.bf16.msra.mxu1 %v1978_v59 }
 0x171   : > { %vm738_vm0 = vcmp.lt.f32.partialorder %v722_v23, -5e+29  ;;  %v698_v33 = vpop.xlane.xlu1 %697  ;;  %v712_v34 = vpop.xlane.xlu0 %711  ;;  %v2563_v37 = vsel %vm745_vm15, 0.0, %v729_v22  ;;  %v801_v46 = vmul.f32 1.442695, %v775_v16 }
 0x172   : > { %v754_v35 = vsel %vm738_vm0, 0.0, %v722_v23  ;;  %v723_v39 = vmax.f32 %v675_v29, %v698_v33  ;;  %v730_v43 = vmax.f32 %v2559_v30, %v712_v34  ;;  %875 = vperm.xlu0 %1969, %v2563_v37   ;;  %1983 = vpow2.f32 %v789_v32 }
 0x173   : > { %840 = vperm.xlu1 %1970, %v754_v35   ;;  %1985 = vpow2.f32 %v785_v44  ;;  %v770_v27 = vsub.f32 %v2547_v13, %v754_v35  ;;  %v777_v2 = vsub.f32 %v2545_v11, %v2563_v37  ;;  %v799_v34 = vmul.f32 1.442695, %v774_v28 }
 0x174   : > { %1357 = vst.msk [vmem:[#allocation2 + $0x30] sm:$0xff] %vm1021_vm5, %v723_v39  ;;  %1364 = vst.msk [vmem:[#allocation2 + $0x68] sm:$0xff] %vm1021_vm5, %v730_v43  ;;  %vm739_vm1 = vcmp.lt.f32.partialorder %v723_v39, -5e+29  ;;  %vm746_vm2 = vcmp.lt.f32.partialorder %v730_v43, -5e+29  ;;  %v2595_v22 = vpop.eup %1979  ;;  %v776_v37 = vsub.f32 %v2530_v60, %v2551_v19 }
 0x175   : > { %v714_v54 = vpop.xlane.xlu1 %713  ;;  %v700_v48 = vpop.xlane.xlu0 %699  ;;  %v755_v55 = vsel %vm739_vm1, 0.0, %v723_v39  ;;  %v2576_v56 = vsel %vm746_vm2, 0.0, %v730_v43  ;;  %v791_v17 = vmul.f32 1.442695, %v770_v27  ;;  %v805_v33 = vmul.f32 1.442695, %v777_v2 }
 0x176   : > { %v731_v61 = vmax.f32 %v2570_v49, %v714_v54  ;;  %v724_v63 = vmax.f32 %v676_v50, %v700_v48  ;;  %845 = vperm.xlu0 %1969, %v755_v55   ;;  %v771_v1 = vsub.f32 %v675_v29, %v755_v55  ;;  %v2605_v26 = vpop.eup %1981  ;;  %v803_v53 = vmul.f32 1.442695, %v776_v37 }
 0x177   : > { %880 = vperm.xlu1 %1970, %v2576_v56   ;;  %v778_v35 = vsub.f32 %v2559_v30, %v2576_v56 }
 0x178   : > { %1365 = vst.msk [vmem:[#allocation2 + $0x70] sm:$0xff] %vm1021_vm5, %v731_v61  ;;  %1358 = vst.msk [vmem:[#allocation2 + $0x38] sm:$0xff] %vm1021_vm5, %v724_v63  ;;  %v793_v41 = vmul.f32 1.442695, %v771_v1  ;;  %vm747_vm3 = vcmp.lt.f32.partialorder %v731_v61, -5e+29 }
 0x179   : > { %vm740_vm4 = vcmp.lt.f32.partialorder %v724_v63, -5e+29  ;;  %v716_v7 = vpop.xlane.xlu0 %715  ;;  %v2586_v10 = vsel %vm747_vm3, 0.0, %v731_v61  ;;  %v807_v60 = vmul.f32 1.442695, %v778_v35 }
 0x17a   : > { %v756_v14 = vsel %vm740_vm4, 0.0, %v724_v63  ;;  %1987 = vpow2.f32 %v793_v41  ;;  %v732_v13 = vmax.f32 %v2581_v5, %v716_v7  ;;  %885 = vperm.xlu0 %1969, %v2586_v10   ;;  %v779_v62 = vsub.f32 %v2570_v49, %v2586_v10 }
 0x17b   : > { %850 = vperm.xlu1 %1970, %v756_v14   ;;  %1989 = vpow2.f32 %v787_v3  ;;  %v772_v21 = vsub.f32 %v676_v50, %v756_v14 }
 0x17c   : > { %1366 = vst.msk [vmem:[#allocation2 + $0x78] sm:$0xff] %vm1021_vm5, %v732_v13  ;;  %vm748_vm6 = vcmp.lt.f32.partialorder %v732_v13, -5e+29  ;;  %1991 = vpow2.f32 %v797_v6 }
 0x17d   : > { %v2597_v23 = vsel %vm748_vm6, 0.0, %v732_v13  ;;  %1993 = vpow2.f32 %v791_v17  ;;  %v795_v29 = vmul.f32 1.442695, %v772_v21 }
 0x17e   : > { %1061 = vperm.xlu0 %1969, %v2595_v22   ;;  %v780_v24 = vsub.f32 %v2581_v5, %v2597_v23  ;;  %1995 = vpow2.f32 %v801_v46 }
 0x17f   : > { %890 = vperm.xlu1 %1970, %v2597_v23   ;;  %v2609_v32 = vpop.eup %1983  ;;  %1997 = vpow2.f32 %v795_v29 }
 0x180   : > { %v2613_v11 = vpop.eup %1985  ;;  %1999 = vpow2.f32 %v805_v33 }
 0x181   : > { %2001 = vpow2.f32 %v799_v34 }
 0x182   : > { %1076 = vperm.xlu0 %1969, %v2609_v32   ;;  %2003 = vpow2.f32 %v803_v53 }
 0x183   : > { %1056 = vperm.xlu1 %1970, %v2605_v26   ;;  %2005 = vpow2.f32 %v807_v60 }
 0x187   : > { %1066 = vperm.xlu1 %1970, %v2613_v11   ;;  %v2618_v36 = vpop.eup %1987 }
 0x188   : > { %1086 = vperm.xlu0 %1969, %v2618_v36   ;;  %v2623_v38 = vpop.eup %1989 }
 0x189   : > { %v2626_v39 = vpop.eup %1991 }
 0x18a   : > { %v2629_v19 = vpop.eup %1993 }
 0x18b   : > { %1071 = vperm.xlu1 %1970, %v2623_v38   ;;  %v2632_v43 = vpop.eup %1995 }
 0x18c   : > { %1096 = vperm.xlu0 %1969, %v2626_v39   ;;  %v2635_v30 = vpop.eup %1997 }
 0x18d   : > { %v2638_v44 = vpop.eup %1999 }
 0x18e   : > { %v2641_v45 = vpop.eup %2001 }
 0x18f   : > { %1081 = vperm.xlu1 %1970, %v2629_v19   ;;  %v2644_v50 = vpop.eup %2003 }
 0x190   : > { %1106 = vperm.xlu0 %1969, %v2632_v43   ;;  %v2647_v51 = vpop.eup %2005 }
 0x193   : > { %1091 = vperm.xlu1 %1970, %v2635_v30  }
 0x194   : > { %1116 = vperm.xlu0 %1969, %v2638_v44  }
 0x197   : > { %1101 = vperm.xlu1 %1970, %v2641_v45  }
 0x19b   : > { %1111 = vperm.xlu1 %1970, %v2644_v50  }
 0x19f   : > { %1121 = vperm.xlu1 %1970, %v2647_v51  }
 0x1d9   : > { %v816_v54 = vpop.permute.xlu1 %815 }
 0x1da   : > { %v893_v48 = vsub.f32 %v2362_v40, %v816_v54 }
 0x1dc   : > { %v909_v55 = vmul.f32 1.442695, %v893_v48 }
 0x1dd   : > { %v856_v56 = vpop.permute.xlu1 %855  ;;  %v821_v59 = vpop.permute.xlu0 %820 }
 0x1de   : > { %2007 = vpow2.f32 %v909_v55  ;;  %v901_v61 = vsub.f32 %v2381_v52, %v856_v56  ;;  %v894_v63 = vsub.f32 %v2386_v58, %v821_v59 }
 0x1e0   : > { %v911_v1 = vmul.f32 1.442695, %v894_v63  ;;  %v925_v3 = vmul.f32 1.442695, %v901_v61 }
 0x1e1   : > { %v861_v27 = vpop.permute.xlu1 %860  ;;  %v826_v41 = vpop.permute.xlu0 %825 }
 0x1e2   : > { %v902_v6 = vsub.f32 %v2403_v9, %v861_v27  ;;  %v895_v7 = vsub.f32 %v2411_v4, %v826_v41  ;;  %2009 = vpow2.f32 %v911_v1 }
 0x1e3   : > { %2011 = vpow2.f32 %v925_v3 }
 0x1e4   : > { %v927_v14 = vmul.f32 1.442695, %v902_v6  ;;  %v913_v16 = vmul.f32 1.442695, %v895_v7 }
 0x1e5   : > { %v831_v40 = vpop.permute.xlu1 %830  ;;  %v866_v13 = vpop.permute.xlu0 %865 }
 0x1e6   : > { %2013 = vpow2.f32 %v927_v14  ;;  %v896_v17 = vsub.f32 %v2423_v25, %v831_v40  ;;  %v903_v52 = vsub.f32 %v2428_v31, %v866_v13 }
 0x1e7   : > { %2015 = vpow2.f32 %v913_v16 }
 0x1e8   : > { %v915_v58 = vmul.f32 1.442695, %v896_v17  ;;  %v929_v21 = vmul.f32 1.442695, %v903_v52 }
 0x1e9   : > { %v871_v46 = vpop.permute.xlu1 %870  ;;  %v836_v2 = vpop.permute.xlu0 %835 }
 0x1ea   : > { %2017 = vpow2.f32 %v915_v58  ;;  %v904_v9 = vsub.f32 %v2444_v42, %v871_v46  ;;  %v897_v4 = vsub.f32 %v2446_v47, %v836_v2 }
 0x1eb   : > { %v2008_v28 = vpop.eup %2007  ;;  %2019 = vpow2.f32 %v929_v21 }
 0x1ec   : > { %v931_v29 = vmul.f32 1.442695, %v904_v9  ;;  %v917_v33 = vmul.f32 1.442695, %v897_v4  ;;  %973 = vadd.xlane.f32.xlu0 %v2008_v28 }
 0x1ed   : > { %v876_v37 = vpop.permute.xlu0 %875 }
 0x1ee   : > { %v841_v34 = vpop.permute.xlu1 %840  ;;  %2021 = vpow2.f32 %v931_v29  ;;  %v905_v31 = vsub.f32 %v2464_v0, %v876_v37  ;;  %v809_v37 = vmul.f32 1.442695, %v779_v62 }
 0x1ef   : > { %v898_v25 = vsub.f32 %v2458_v57, %v841_v34  ;;  %2023 = vpow2.f32 %v917_v33  ;;  %v2010_v53 = vpop.eup %2009  ;;  %v811_v34 = vmul.f32 1.442695, %v780_v24 }
 0x1f0   : > { %v933_v60 = vmul.f32 1.442695, %v905_v31  ;;  %975 = vadd.xlane.f32.xlu1 %v2010_v53  ;;  %v1150_v47 = vpack.c.bf16 %v2010_v53, %v2008_v28  ;;  %v2012_v48 = vpop.eup %2011 }
 0x1f1   : > { %v919_v35 = vmul.f32 1.442695, %v898_v25  ;;  %v846_v54 = vpop.permute.xlu0 %845 }
 0x1f2   : > { %v881_v42 = vpop.permute.xlu1 %880  ;;  %v899_v56 = vsub.f32 %v2475_v15, %v846_v54  ;;  %1877 = vmatprep.mubr.bf16.mxu0 %v1150_v47 }
 0x1f3   : > { %2025 = vpow2.f32 %v919_v35  ;;  %v906_v55 = vsub.f32 %v2473_v12, %v881_v42  ;;  %v2014_v59 = vpop.eup %2013 }
 0x1f4   : > { %v2016_v61 = vpop.eup %2015  ;;  %v921_v63 = vmul.f32 1.442695, %v899_v56  ;;  %v1154_v0 = vpack.c.bf16 %v2014_v59, %v2012_v48  ;;  %2027 = vpow2.f32 %v933_v60 }
 0x1f5   : > { %v935_v57 = vmul.f32 1.442695, %v906_v55  ;;  %977 = vadd.xlane.f32.xlu0 %v2016_v61  ;;  %v886_v3 = vpop.permute.xlu0 %885  ;;  %v941_v55 = vld [vmem:[#allocation3] sm:$0xff] }
 0x1f6   : > { %v851_v1 = vpop.permute.xlu1 %850  ;;  %v907_v41 = vsub.f32 %v2481_v8, %v886_v3  ;;  %1885 = vmatprep.mubr.bf16.mxu1 %v1154_v0  ;;  %v957_v56 = vmul.f32 %v2605_v26, %v941_v55  ;;  %v943_v3 = vld [vmem:[#allocation3 + $0x10] sm:$0xff] }
 0x1f7   : > { %2029 = vpow2.f32 %v935_v57  ;;  %v900_v27 = vsub.f32 %v2479_v18, %v851_v1  ;;  %v2018_v6 = vpop.eup %2017 }
 0x1f8   : > { %2031 = vpow2.f32 %v921_v63  ;;  %v1151_v15 = vpack.c.bf16 %v2018_v6, %v2016_v61  ;;  %v937_v7 = vmul.f32 1.442695, %v907_v41  ;;  %v2020_v16 = vpop.eup %2019  ;;  %v942_v63 = vld [vmem:[#allocation3 + $0x8] sm:$0xff]  ;;  %v959_v41 = vmul.f32 %v2613_v11, %v943_v3 }
 0x1f9   : > { %v923_v12 = vmul.f32 1.442695, %v900_v27  ;;  %979 = vadd.xlane.f32.xlu0 %v2018_v6  ;;  %v2682_v23 = vpop.permute.xlu0 %1061  ;;  %v958_v0 = vmul.f32 %v2595_v22, %v942_v63 }
 0x1fa   : > { %v891_v14 = vpop.permute.xlu1 %890  ;;  %1878 = vmatmul.mubr.bf16.vlgmr.msra.gmra.mxu0 %v1151_v15 }
 0x1fb   : > { %2033 = vpow2.f32 %v923_v12  ;;  %v908_v40 = vsub.f32 %v2485_v20, %v891_v14  ;;  %v2022_v13 = vpop.eup %2021  ;;  %v944_v12 = vld [vmem:[#allocation3 + $0x18] sm:$0xff]  ;;  %v945_v14 = vld [vmem:[#allocation3 + $0x20] sm:$0xff] }
 0x1fc   : > { %v2024_v17 = vpop.eup %2023  ;;  %v1155_v58 = vpack.c.bf16 %v2022_v13, %v2020_v16  ;;  %2035 = vpow2.f32 %v937_v7  ;;  %v960_v26 = vmul.f32 %v2623_v38, %v944_v12  ;;  %v961_v22 = vmul.f32 %v2609_v32, %v945_v14 }
 0x1fd   : > { %v939_v52 = vmul.f32 1.442695, %v908_v40  ;;  %981 = vadd.xlane.f32.xlu1 %v2024_v17  ;;  %v2686_v35 = vpop.permute.xlu0 %1076  ;;  %v946_v40 = vld [vmem:[#allocation3 + $0x28] sm:$0xff] }
 0x1fe   : > { %1886 = vmatmul.mubr.bf16.vlgmr.msra.gmra.mxu1 %v1155_v58  ;;  %v2678_v53 = vpop.permute.xlu1 %1056 }
 0x1ff   : > { %2037 = vpow2.f32 %v939_v52  ;;  %v962_v52 = vmul.f32 %v2629_v19, %v946_v40 }
 0x200   : > { %v2026_v18 = vpop.eup %2025  ;;  %2039 = vpow2.f32 %v811_v34 }
 0x201   : > { %983 = vadd.xlane.f32.xlu0 %v2026_v18  ;;  %v1152_v8 = vpack.c.bf16 %v2026_v18, %v2024_v17  ;;  %v2028_v21 = vpop.eup %2027  ;;  %2041 = vpow2.f32 %v809_v37  ;;  %v947_v18 = vld [vmem:[#allocation3 + $0x30] sm:$0xff] }
 0x202   : > { %v2680_v5 = vpop.permute.xlu1 %1066  ;;  %v963_v38 = vmul.f32 %v2618_v36, %v947_v18  ;;  %v1046_v18 = vld [vmem:[#allocation4 + $0x40] sm:$0xff] }
 0x203   : > { %1881 = vmatprep.mubr.bf16.mxu0 %v1152_v8  ;;  %v2690_v10 = vpop.permute.xlu0 %1086  ;;  %v948_v8 = vld [vmem:[#allocation3 + $0x38] sm:$0xff] }
 0x204   : > { %v2030_v46 = vpop.eup %2029  ;;  %v964_v32 = vmul.f32 %v2635_v30, %v948_v8  ;;  %v952_v30 = vld [vmem:[#allocation3 + $0x58] sm:$0xff] }
 0x205   : > { %v2032_v2 = vpop.eup %2031  ;;  %v1156_v9 = vpack.c.bf16 %v2030_v46, %v2028_v21 }
 0x206   : > { %985 = vadd.xlane.f32.xlu1 %v2032_v2  ;;  %v2684_v24 = vpop.permute.xlu1 %1071 }
 0x207   : > { %1889 = vmatprep.mubr.bf16.mxu1 %v1156_v9  ;;  %v2694_v60 = vpop.permute.xlu0 %1096 }
 0x208   : > { %v2034_v20 = vpop.eup %2033 }
 0x209   : > { %987 = vadd.xlane.f32.xlu0 %v2034_v20  ;;  %v1153_v4 = vpack.c.bf16 %v2034_v20, %v2032_v2  ;;  %v2036_v28 = vpop.eup %2035  ;;  %v950_v20 = vld [vmem:[#allocation3 + $0x48] sm:$0xff] }
 0x20a   : > { %989 = vadd.xlane.f32.xlu1 %v2012_v48  ;;  %v2688_v49 = vpop.permute.xlu1 %1081  ;;  %v966_v36 = vmul.f32 %v2641_v45, %v950_v20  ;;  %v954_v45 = vld [vmem:[#allocation3 + $0x68] sm:$0xff]  ;;  %v1047_v20 = vld [vmem:[#allocation4 + $0x20] sm:$0xff] }
 0x20b   : > { %1882 = vmatmul.mubr.bf16.gmra.mxu0 %v1153_v4  ;;  %v2698_v54 = vpop.permute.xlu0 %1106 }
 0x20c   : > { %v2038_v29 = vpop.eup %2037 }
 0x20d   : > { %991 = vadd.xlane.f32.xlu0 %v2014_v59  ;;  %v1157_v33 = vpack.c.bf16 %v2038_v29, %v2036_v28  ;;  %v2672_v25 = vpop.eup %2039 }
 0x20e   : > { %993 = vadd.xlane.f32.xlu1 %v2020_v16  ;;  %v2675_v31 = vpop.eup %2041  ;;  %v2692_v62 = vpop.permute.xlu1 %1091 }
 0x20f   : > { %1890 = vmatmul.mubr.bf16.gmra.mxu1 %v1157_v33  ;;  %v2702_v48 = vpop.permute.xlu0 %1116 }
 0x211   : > { %995 = vadd.xlane.f32.xlu0 %v2022_v13 }
 0x212   : > { %997 = vadd.xlane.f32.xlu1 %v2028_v21  ;;  %v2696_v42 = vpop.permute.xlu1 %1101 }
 0x215   : > { %999 = vadd.xlane.f32.xlu0 %v2030_v46  ;;  %v949_v46 = vld [vmem:[#allocation3 + $0x40] sm:$0xff] }
 0x216   : > { %1001 = vadd.xlane.f32.xlu1 %v2036_v28  ;;  %v2700_v47 = vpop.permute.xlu1 %1111  ;;  %v965_v9 = vmul.f32 %v2626_v39, %v949_v46  ;;  %v1049_v46 = vld [vmem:[#allocation4 + $0x38] sm:$0xff] }
 0x219   : > { %1003 = vadd.xlane.f32.xlu0 %v2038_v29  ;;  %v951_v29 = vld [vmem:[#allocation3 + $0x50] sm:$0xff] }
 0x21a   : > { %v2705_v61 = vpop.permute.xlu1 %1121  ;;  %v967_v34 = vmul.f32 %v2632_v43, %v951_v29  ;;  %v1145_v29 = vmul.f32 %v2700_v47, %v1049_v46  ;;  %v1052_v47 = vld [vmem:[#allocation4 + $0x78] sm:$0xff] }
 0x227   : > { %1131 = vperm.xlu1 %1970, %v2672_v25  }
 0x22f   : > { %1126 = vperm.xlu0 %1969, %v2675_v31  }
 0x275   : > { %v974_v59 = vpop.xlane.xlu0 %973 }
 0x276   : > { %v1005_v57 = vadd.f32 %v974_v59, %v957_v56  ;;  %v953_v59 = vld [vmem:[#allocation3 + $0x60] sm:$0xff] }
 0x277   : > { %v969_v63 = vmul.f32 %v2638_v44, %v953_v59 }
 0x278   : > { %1022 = vst.msk [vmem:[#allocation3] sm:$0xff] %vm1021_vm5, %v1005_v57  ;;  %v968_v57 = vmul.f32 %v2644_v50, %v952_v30  ;;  %v956_v50 = vld [vmem:[#allocation3 + $0x78] sm:$0xff]  ;;  %v1042_v30 = vld [vmem:[#allocation4 + $0x50] sm:$0xff] }
 0x279   : > { %v976_v1 = vpop.xlane.xlu1 %975  ;;  %v972_v44 = vmul.f32 %v2672_v25, %v956_v50 }
 0x27a   : > { %v1006_v27 = vadd.f32 %v976_v1, %v958_v0 }
 0x27c   : > { %1023 = vst.msk [vmem:[#allocation3 + $0x8] sm:$0xff] %vm1021_vm5, %v1006_v27  ;;  %v955_v27 = vld [vmem:[#allocation3 + $0x70] sm:$0xff] }
 0x27e   : > { %v978_v6 = vpop.xlane.xlu0 %977 }
 0x27f   : > { %v1007_v15 = vadd.f32 %v978_v6, %v959_v41  ;;  %v970_v41 = vmul.f32 %v2647_v51, %v954_v45  ;;  %v971_v6 = vmul.f32 %v2675_v31, %v955_v27  ;;  %v1040_v51 = vld [vmem:[#allocation4 + $0x58] sm:$0xff] }
 0x280   : > { %v1136_v40 = vmul.f32 %v2680_v5, %v1040_v51  ;;  %v1041_v31 = vld [vmem:[#allocation4 + $0x18] sm:$0xff] }
 0x281   : > { %1024 = vst.msk [vmem:[#allocation3 + $0x10] sm:$0xff] %vm1021_vm5, %v1007_v15  ;;  %v1137_v25 = vmul.f32 %v2684_v24, %v1041_v31 }
 0x282   : > { %v980_v7 = vpop.xlane.xlu0 %979 }
 0x283   : > { %v1008_v16 = vadd.f32 %v980_v7, %v960_v26 }
 0x285   : > { %1025 = vst.msk [vmem:[#allocation3 + $0x18] sm:$0xff] %vm1021_vm5, %v1008_v16 }
 0x286   : > { %v982_v13 = vpop.xlane.xlu1 %981 }
 0x287   : > { %v1009_v17 = vadd.f32 %v982_v13, %v961_v22  ;;  %v1038_v22 = vld [vmem:[#allocation4 + $0x30] sm:$0xff] }
 0x288   : > { %v1048_v13 = vld [vmem:[#allocation4 + $0x10] sm:$0xff] }
 0x289   : > { %1026 = vst.msk [vmem:[#allocation3 + $0x20] sm:$0xff] %vm1021_vm5, %v1009_v17  ;;  %v1144_v8 = vmul.f32 %v2698_v54, %v1048_v13 }
 0x28a   : > { %v984_v11 = vpop.xlane.xlu0 %983 }
 0x28b   : > { %v1010_v58 = vadd.f32 %v984_v11, %v962_v52  ;;  %v1134_v52 = vmul.f32 %v2678_v53, %v1038_v22 }
 0x28d   : > { %1027 = vst.msk [vmem:[#allocation3 + $0x28] sm:$0xff] %vm1021_vm5, %v1010_v58  ;;  %v1039_v58 = vld [vmem:[#allocation4] sm:$0xff] }
 0x28e   : > { %v1135_v5 = vmul.f32 %v2682_v23, %v1039_v58 }
 0x28f   : > { %v986_v21 = vpop.xlane.xlu1 %985 }
 0x290   : > { %v1011_v2 = vadd.f32 %v986_v21, %v963_v38 }
 0x292   : > { %1028 = vst.msk [vmem:[#allocation3 + $0x30] sm:$0xff] %vm1021_vm5, %v1011_v2  ;;  %v988_v19 = vpop.xlane.xlu0 %987 }
 0x293   : > { %v990_v4 = vpop.xlane.xlu1 %989  ;;  %v1012_v28 = vadd.f32 %v988_v19, %v964_v32 }
 0x294   : > { %v1013_v33 = vadd.f32 %v990_v4, %v965_v9  ;;  %v1142_v9 = vmul.f32 %v2694_v60, %v1046_v18 }
 0x295   : > { %1029 = vst.msk [vmem:[#allocation3 + $0x38] sm:$0xff] %vm1021_vm5, %v1012_v28 }
 0x296   : > { %1030 = vst.msk [vmem:[#allocation3 + $0x40] sm:$0xff] %vm1021_vm5, %v1013_v33  ;;  %v992_v37 = vpop.xlane.xlu0 %991 }
 0x297   : > { %v994_v55 = vpop.xlane.xlu1 %993  ;;  %v1014_v56 = vadd.f32 %v992_v37, %v966_v36  ;;  %v1143_v36 = vmul.f32 %v2696_v42, %v1047_v20  ;;  %v1044_v37 = vld [vmem:[#allocation4 + $0x8] sm:$0xff]  ;;  %v1050_v42 = vld [vmem:[#allocation4 + $0x60] sm:$0xff] }
 0x298   : > { %v1015_v39 = vadd.f32 %v994_v55, %v967_v34  ;;  %v1140_v55 = vmul.f32 %v2690_v10, %v1044_v37  ;;  %v1146_v50 = vmul.f32 %v2702_v48, %v1050_v42 }
 0x299   : > { %1031 = vst.msk [vmem:[#allocation3 + $0x48] sm:$0xff] %vm1021_vm5, %v1014_v56  ;;  %v1045_v56 = vld [vmem:[#allocation4 + $0x48] sm:$0xff] }
 0x29a   : > { %1032 = vst.msk [vmem:[#allocation3 + $0x50] sm:$0xff] %vm1021_vm5, %v1015_v39  ;;  %v996_v0 = vpop.xlane.xlu0 %995 }
 0x29b   : > { %v998_v1 = vpop.xlane.xlu1 %997  ;;  %v1016_v3 = vadd.f32 %v996_v0, %v968_v57  ;;  %v1138_v57 = vmul.f32 %v2686_v35, %v1042_v30  ;;  %v1043_v0 = vld [vmem:[#allocation4 + $0x68] sm:$0xff] }
 0x29c   : > { %v1017_v43 = vadd.f32 %v998_v1, %v969_v63  ;;  %v1141_v1 = vmul.f32 %v2692_v62, %v1045_v56  ;;  %v1139_v10 = vmul.f32 %v2688_v49, %v1043_v0 }
 0x29d   : > { %1033 = vst.msk [vmem:[#allocation3 + $0x58] sm:$0xff] %vm1021_vm5, %v1016_v3 }
 0x29e   : > { %1034 = vst.msk [vmem:[#allocation3 + $0x60] sm:$0xff] %vm1021_vm5, %v1017_v43  ;;  %v1000_v12 = vpop.xlane.xlu0 %999 }
 0x29f   : > { %v1002_v15 = vpop.xlane.xlu1 %1001  ;;  %v1018_v26 = vadd.f32 %v1000_v12, %v970_v41  ;;  %v1053_v41 = vld [vmem:[#allocation4 + $0x28] sm:$0xff] }
 0x2a0   : > { %v1019_v7 = vadd.f32 %v1002_v15, %v971_v6 }
 0x2a1   : > { %1035 = vst.msk [vmem:[#allocation3 + $0x68] sm:$0xff] %vm1021_vm5, %v1018_v26  ;;  %v1051_v26 = vld [vmem:[#allocation4 + $0x70] sm:$0xff] }
 0x2a2   : > { %1036 = vst.msk [vmem:[#allocation3 + $0x70] sm:$0xff] %vm1021_vm5, %v1019_v7  ;;  %v1004_v14 = vpop.xlane.xlu0 %1003  ;;  %v1147_v22 = vmul.f32 %v2705_v61, %v1051_v26 }
 0x2a3   : > { %v1020_v16 = vadd.f32 %v1004_v14, %v972_v44  ;;  %v1132_v3 = vpop.permute.xlu1 %1131 }
 0x2a4   : > { %v1149_v14 = vmul.f32 %v1132_v3, %v1053_v41 }
 0x2a5   : > { %1037 = vst.msk [vmem:[#allocation3 + $0x78] sm:$0xff] %vm1021_vm5, %v1020_v16 }
 0x2aa   : > { %v1127_v59 = vpop.permute.xlu0 %1126 }
 0x2ab   : > { %v1148_v27 = vmul.f32 %v1127_v59, %v1052_v47 }
 0x2ba   : > { %v1879_v17 = vpop.f32.mrf.mxu0 }
 0x2bb   : > { %v1321_v11 = vadd.f32 %v1879_v17, %v1136_v40 }
 0x2bc   : > { %v1256_v38 = vpop.f32.mrf.mxu0 }
 0x2bd   : > { %1337 = vst [vmem:[#allocation4 + $0x58] sm:$0xff] %v1321_v11  ;;  %v1319_v21 = vadd.f32 %v1256_v38, %v1134_v52 }
 0x2be   : > { %v1880_v2 = vpop.f32.mrf.mxu0  ;;  %v1887_v32 = vpop.f32.mrf.mxu1 }
 0x2bf   : > { %1335 = vst [vmem:[#allocation4 + $0x30] sm:$0xff] %v1319_v21  ;;  %v1322_v19 = vadd.f32 %v1880_v2, %v1137_v25  ;;  %v1329_v53 = vadd.f32 %v1887_v32, %v1144_v8 }
 0x2c0   : > { %v1259_v4 = vpop.f32.mrf.mxu0  ;;  %v1288_v28 = vpop.f32.mrf.mxu1 }
 0x2c1   : > { %1338 = vst [vmem:[#allocation4 + $0x18] sm:$0xff] %v1322_v19  ;;  %1345 = vst [vmem:[#allocation4 + $0x10] sm:$0xff] %v1329_v53  ;;  %v1320_v24 = vadd.f32 %v1259_v4, %v1135_v5  ;;  %v1327_v54 = vadd.f32 %v1288_v28, %v1142_v9 }
 0x2c2   : > { %v1888_v33 = vpop.f32.mrf.mxu1 }
 0x2c3   : > { %1336 = vst [vmem:[#allocation4] sm:$0xff] %v1320_v24  ;;  %1343 = vst [vmem:[#allocation4 + $0x40] sm:$0xff] %v1327_v54  ;;  %v1330_v23 = vadd.f32 %v1888_v33, %v1145_v29 }
 0x2c4   : > { %v1291_v34 = vpop.f32.mrf.mxu1 }
 0x2c5   : > { %1346 = vst [vmem:[#allocation4 + $0x38] sm:$0xff] %v1330_v23  ;;  %v1328_v60 = vadd.f32 %v1291_v34, %v1143_v36 }
 0x2c7   : > { %1344 = vst [vmem:[#allocation4 + $0x20] sm:$0xff] %v1328_v60 }
 0x2cb   : > { %v1883_v39 = vpop.f32.mrf.mxu0 }
 0x2cc   : > { %v1325_v63 = vadd.f32 %v1883_v39, %v1140_v55 }
 0x2cd   : > { %v1272_v45 = vpop.f32.mrf.mxu0 }
 0x2ce   : > { %1341 = vst [vmem:[#allocation4 + $0x8] sm:$0xff] %v1325_v63  ;;  %v1323_v43 = vadd.f32 %v1272_v45, %v1138_v57 }
 0x2cf   : > { %v1884_v6 = vpop.f32.mrf.mxu0  ;;  %v1891_v12 = vpop.f32.mrf.mxu1 }
 0x2d0   : > { %1339 = vst [vmem:[#allocation4 + $0x50] sm:$0xff] %v1323_v43  ;;  %v1326_v15 = vadd.f32 %v1884_v6, %v1141_v1  ;;  %v1333_v35 = vadd.f32 %v1891_v12, %v1148_v27 }
 0x2d1   : > { %v1275_v7 = vpop.f32.mrf.mxu0  ;;  %v1304_v44 = vpop.f32.mrf.mxu1 }
 0x2d2   : > { %1342 = vst [vmem:[#allocation4 + $0x48] sm:$0xff] %v1326_v15  ;;  %1349 = vst [vmem:[#allocation4 + $0x78] sm:$0xff] %v1333_v35  ;;  %v1324_v62 = vadd.f32 %v1275_v7, %v1139_v10  ;;  %v1331_v16 = vadd.f32 %v1304_v44, %v1146_v50 }
 0x2d3   : > { %v1892_v51 = vpop.f32.mrf.mxu1 }
 0x2d4   : > { %1340 = vst [vmem:[#allocation4 + $0x68] sm:$0xff] %v1324_v62  ;;  %1347 = vst [vmem:[#allocation4 + $0x60] sm:$0xff] %v1331_v16  ;;  %v1334_v40 = vadd.f32 %v1892_v51, %v1149_v14  ;;  %1370 = sbr.rel (%p1762_p0) target bundleno = 904 (0x388), region = 82 }
 0x2d5   : > { %v1307_v49 = vpop.f32.mrf.mxu1 }
 0x2d6   : > { %1350 = vst [vmem:[#allocation4 + $0x28] sm:$0xff] %v1334_v40  ;;  %v1332_v48 = vadd.f32 %v1307_v49, %v1147_v22 }
 0x2d8   : > { %1348 = vst [vmem:[#allocation4 + $0x70] sm:$0xff] %v1332_v48 }
 0x2d9   : > { %v1373_v31 = vld [vmem:[#allocation3 + $0x10] sm:$0xff]  ;;  %v1371_v13 = vld [vmem:[#allocation3] sm:$0xff]  ;;  %v1374_v17 = vld [vmem:[#allocation3 + $0x18] sm:$0xff]  ;;  %v2136_v52 = vmov 0  }
 0x2da   : > { %2044 = vset.pattern.permute.xlu1 %v2136_v52  ;;  %2043 = vset.pattern.permute.xlu0 %v2136_v52  ;;  %vm1389_vm5 = vcmp.gt.f32.partialorder %v1373_v31, 0.0  ;;  %vm1387_vm7 = vcmp.gt.f32.partialorder %v1371_v13, 0.0  ;;  %vm1390_vm8 = vcmp.gt.f32.partialorder %v1374_v17, 0.0  ;;  %v1372_v61 = vld [vmem:[#allocation3 + $0x8] sm:$0xff]  ;;  %v1375_v58 = vld [vmem:[#allocation3 + $0x20] sm:$0xff]  ;;  %v1378_v21 = vld [vmem:[#allocation3 + $0x38] sm:$0xff] }
 0x2db   : > { %v1376_v11 = vld [vmem:[#allocation3 + $0x28] sm:$0xff]  ;;  %v1405_v18 = vsel %vm1389_vm5, %v1373_v31, 1.0  ;;  %v1403_v38 = vsel %vm1387_vm7, %v1371_v13, 1.0  ;;  %v1406_v25 = vsel %vm1390_vm8, %v1374_v17, 1.0  ;;  %vm1388_vm9 = vcmp.gt.f32.partialorder %v1372_v61, 0.0  ;;  %v1377_v46 = vld [vmem:[#allocation3 + $0x30] sm:$0xff] }
 0x2dc   : > { %2045 = vrcp.f32 %v1405_v18  ;;  %v1404_v8 = vsel %vm1388_vm9, %v1372_v61, 1.0  ;;  %vm1392_vm10 = vcmp.gt.f32.partialorder %v1376_v11, 0.0  ;;  %vm1391_vm11 = vcmp.gt.f32.partialorder %v1375_v58, 0.0  ;;  %v1380_v5 = vld [vmem:[#allocation3 + $0x48] sm:$0xff]  ;;  %v1379_v9 = vld [vmem:[#allocation3 + $0x40] sm:$0xff]  ;;  %v1382_v20 = vld [vmem:[#allocation3 + $0x58] sm:$0xff] }
 0x2dd   : > { %2047 = vrcp.f32 %v1403_v38  ;;  %v1408_v2 = vsel %vm1392_vm10, %v1376_v11, 1.0  ;;  %v1407_v32 = vsel %vm1391_vm11, %v1375_v58, 1.0  ;;  %vm1394_vm12 = vcmp.gt.f32.partialorder %v1378_v21, 0.0  ;;  %v1381_v4 = vld [vmem:[#allocation3 + $0x50] sm:$0xff]  ;;  %v1384_v54 = vld [vmem:[#allocation3 + $0x68] sm:$0xff]  ;;  %v1383_v36 = vld [vmem:[#allocation3 + $0x60] sm:$0xff] }
 0x2de   : > { %2049 = vrcp.f32 %v1406_v25  ;;  %vm1393_vm13 = vcmp.gt.f32.partialorder %v1377_v46, 0.0  ;;  %v1410_v19 = vsel %vm1394_vm12, %v1378_v21, 1.0  ;;  %vm1396_vm14 = vcmp.gt.f32.partialorder %v1380_v5, 0.0  ;;  %v1386_v30 = vld [vmem:[#allocation3 + $0x78] sm:$0xff]  ;;  %v1385_v55 = vld [vmem:[#allocation3 + $0x70] sm:$0xff]  ;;  %v1420_v7 = vld [vmem:[#allocation4] sm:$0xff] }
 0x2df   : > { %2051 = vrcp.f32 %v1404_v8  ;;  %v1409_v53 = vsel %vm1393_vm13, %v1377_v46, 1.0  ;;  %vm1395_vm15 = vcmp.gt.f32.partialorder %v1379_v9, 0.0  ;;  %v1412_v28 = vsel %vm1396_vm14, %v1380_v5, 1.0  ;;  %v1421_v15 = vld [vmem:[#allocation4 + $0x58] sm:$0xff]  ;;  %v1419_v26 = vld [vmem:[#allocation4 + $0x30] sm:$0xff]  ;;  %v1424_v40 = vld [vmem:[#allocation4 + $0x68] sm:$0xff] }
 0x2e0   : > { %2053 = vrcp.f32 %v1408_v2  ;;  %v1411_v29 = vsel %vm1395_vm15, %v1379_v9, 1.0  ;;  %vm1398_vm0 = vcmp.gt.f32.partialorder %v1382_v20, 0.0  ;;  %vm1397_vm1 = vcmp.gt.f32.partialorder %v1381_v4, 0.0  ;;  %v1422_v35 = vld [vmem:[#allocation4 + $0x18] sm:$0xff]  ;;  %v1423_v48 = vld [vmem:[#allocation4 + $0x50] sm:$0xff]  ;;  %v1426_v11 = vld [vmem:[#allocation4 + $0x48] sm:$0xff] }
 0x2e1   : > { %2055 = vrcp.f32 %v1407_v32  ;;  %v1414_v34 = vsel %vm1398_vm0, %v1382_v20, 1.0  ;;  %v1413_v37 = vsel %vm1397_vm1, %v1381_v4, 1.0  ;;  %vm1400_vm2 = vcmp.gt.f32.partialorder %v1384_v54, 0.0  ;;  %v1425_v58 = vld [vmem:[#allocation4 + $0x8] sm:$0xff]  ;;  %v1428_v46 = vld [vmem:[#allocation4 + $0x20] sm:$0xff]  ;;  %v1430_v20 = vld [vmem:[#allocation4 + $0x38] sm:$0xff] }
 0x2e2   : > { %2057 = vrcp.f32 %v1410_v19  ;;  %vm1399_vm3 = vcmp.gt.f32.partialorder %v1383_v36, 0.0  ;;  %v1416_v47 = vsel %vm1400_vm2, %v1384_v54, 1.0  ;;  %vm1402_vm4 = vcmp.gt.f32.partialorder %v1386_v30, 0.0  ;;  %v1427_v2 = vld [vmem:[#allocation4 + $0x40] sm:$0xff]  ;;  %v1429_v4 = vld [vmem:[#allocation4 + $0x10] sm:$0xff] }
 0x2e3   : > { %2059 = vrcp.f32 %v1409_v53  ;;  %v1415_v39 = vsel %vm1399_vm3, %v1383_v36, 1.0  ;;  %vm1401_vm6 = vcmp.gt.f32.partialorder %v1385_v55, 0.0  ;;  %v1418_v63 = vsel %vm1402_vm4, %v1386_v30, 1.0  ;;  %v1432_v36 = vld [vmem:[#allocation4 + $0x70] sm:$0xff] }
 0x2e4   : > { %2061 = vrcp.f32 %v1412_v28  ;;  %v1417_v42 = vsel %vm1401_vm6, %v1385_v55, 1.0 }
 0x2e5   : > { %2063 = vrcp.f32 %v1411_v29 }
 0x2e6   : > { %2065 = vrcp.f32 %v1414_v34 }
 0x2e7   : > { %2067 = vrcp.f32 %v1413_v37 }
 0x2e8   : > { %2069 = vrcp.f32 %v1416_v47  ;;  %v1433_v47 = vld [vmem:[#allocation4 + $0x78] sm:$0xff] }
 0x2e9   : > { %v2046_v24 = vpop.eup %2045  ;;  %2071 = vrcp.f32 %v1415_v39 }
 0x2ea   : > { %v2048_v33 = vpop.eup %2047  ;;  %1463 = vperm.xlu1 %2044, %v2046_v24   ;;  %2073 = vrcp.f32 %v1418_v63 }
 0x2eb   : > { %v2050_v23 = vpop.eup %2049  ;;  %1453 = vperm.xlu0 %2043, %v2048_v33   ;;  %2075 = vrcp.f32 %v1417_v42 }
 0x2ec   : > { %v2052_v60 = vpop.eup %2051 }
 0x2ed   : > { %v2054_v56 = vpop.eup %2053 }
 0x2ee   : > { %1468 = vperm.xlu1 %2044, %v2050_v23   ;;  %v2056_v59 = vpop.eup %2055  ;;  %v1431_v23 = vld [vmem:[#allocation4 + $0x60] sm:$0xff] }
 0x2ef   : > { %1458 = vperm.xlu0 %2043, %v2052_v60   ;;  %v2058_v57 = vpop.eup %2057 }
 0x2f0   : > { %v2060_v0 = vpop.eup %2059 }
 0x2f1   : > { %v2062_v45 = vpop.eup %2061 }
 0x2f2   : > { %1478 = vperm.xlu1 %2044, %v2054_v56   ;;  %v2064_v1 = vpop.eup %2063  ;;  %v1434_v56 = vld [vmem:[#allocation4 + $0x28] sm:$0xff] }
 0x2f3   : > { %1473 = vperm.xlu0 %2043, %v2056_v59   ;;  %v2066_v3 = vpop.eup %2065 }
 0x2f4   : > { %v2068_v27 = vpop.eup %2067 }
 0x2f5   : > { %v2070_v43 = vpop.eup %2069 }
 0x2f6   : > { %1488 = vperm.xlu1 %2044, %v2058_v57   ;;  %v2072_v41 = vpop.eup %2071 }
 0x2f7   : > { %1483 = vperm.xlu0 %2043, %v2060_v0   ;;  %v2074_v6 = vpop.eup %2073 }
 0x2f8   : > { %v2076_v12 = vpop.eup %2075 }
 0x2fa   : > { %1498 = vperm.xlu1 %2044, %v2062_v45  }
 0x2fb   : > { %1493 = vperm.xlu0 %2043, %v2064_v1  }
 0x2fe   : > { %1508 = vperm.xlu1 %2044, %v2066_v3  }
 0x2ff   : > { %1503 = vperm.xlu0 %2043, %v2068_v27  }
 0x302   : > { %1518 = vperm.xlu1 %2044, %v2070_v43  }
 0x303   : > { %1513 = vperm.xlu0 %2043, %v2072_v41  }
 0x306   : > { %1528 = vperm.xlu1 %2044, %v2074_v6  }
 0x307   : > { %1523 = vperm.xlu0 %2043, %v2076_v12  }
 0x365   : > { %v1464_v10 = vpop.permute.xlu1 %1463 }
 0x366   : > { %v1454_v50 = vpop.permute.xlu0 %1453  ;;  %v1533_v14 = vmul.f32 %v1464_v10, %v1421_v15 }
 0x367   : > { %v1531_v51 = vmul.f32 %v1454_v50, %v1419_v26 }
 0x369   : > { %v1469_v44 = vpop.permute.xlu1 %1468 }
 0x36a   : > { %v1534_v62 = vmul.f32 %v1469_v44, %v1422_v35  ;;  %v1459_v16 = vpop.permute.xlu0 %1458 }
 0x36b   : > { %v1532_v22 = vmul.f32 %v1459_v16, %v1420_v7 }
 0x36c   : > { %v1806_v49 = vpack.c.bf16 %v1534_v62, %v1533_v14 }
 0x36d   : > { %v1801_v31 = vpack.c.bf16 %v1532_v22, %v1531_v51  ;;  %v1479_v13 = vpop.permute.xlu1 %1478 }
 0x36e   : > { %1838 = vst [vmem:[%s2243_s9 + $0x8] sm:$0xff] %v1806_v49   ;;  %v1536_v17 = vmul.f32 %v1479_v13, %v1424_v40  ;;  %v1474_v52 = vpop.permute.xlu0 %1473 }
 0x36f   : > { %1802 = vst [vmem:[%s2243_s9] sm:$0xff] %v1801_v31   ;;  %v1535_v61 = vmul.f32 %v1474_v52, %v1423_v48 }
 0x371   : > { %v1811_v18 = vpack.c.bf16 %v1536_v17, %v1535_v61  ;;  %v1489_v38 = vpop.permute.xlu1 %1488 }
 0x372   : > { %v1538_v25 = vmul.f32 %v1489_v38, %v1426_v11  ;;  %v1484_v8 = vpop.permute.xlu0 %1483 }
 0x373   : > { %1839 = vst [vmem:[%s2243_s9 + $0x10] sm:$0xff] %v1811_v18   ;;  %v1537_v21 = vmul.f32 %v1484_v8, %v1425_v58 }
 0x375   : > { %v1816_v32 = vpack.c.bf16 %v1538_v25, %v1537_v21  ;;  %v1499_v5 = vpop.permute.xlu1 %1498 }
 0x376   : > { %v1540_v9 = vmul.f32 %v1499_v5, %v1428_v46  ;;  %v1494_v19 = vpop.permute.xlu0 %1493 }
 0x377   : > { %1840 = vst [vmem:[%s2243_s9 + $0x18] sm:$0xff] %v1816_v32   ;;  %v1539_v53 = vmul.f32 %v1494_v19, %v1427_v2 }
 0x379   : > { %v1821_v28 = vpack.c.bf16 %v1540_v9, %v1539_v53  ;;  %v1509_v29 = vpop.permute.xlu1 %1508 }
 0x37a   : > { %v1542_v24 = vmul.f32 %v1509_v29, %v1430_v20  ;;  %v1504_v54 = vpop.permute.xlu0 %1503 }
 0x37b   : > { %1841 = vst [vmem:[%s2243_s9 + $0x20] sm:$0xff] %v1821_v28   ;;  %v1541_v33 = vmul.f32 %v1504_v54, %v1429_v4 }
 0x37d   : > { %v1826_v34 = vpack.c.bf16 %v1542_v24, %v1541_v33  ;;  %v1519_v60 = vpop.permute.xlu1 %1518 }
 0x37e   : > { %v1544_v37 = vmul.f32 %v1519_v60, %v1432_v36  ;;  %v1514_v30 = vpop.permute.xlu0 %1513 }
 0x37f   : > { %1842 = vst [vmem:[%s2243_s9 + $0x28] sm:$0xff] %v1826_v34   ;;  %v1543_v55 = vmul.f32 %v1514_v30, %v1431_v23 }
 0x381   : > { %v1831_v59 = vpack.c.bf16 %v1544_v37, %v1543_v55  ;;  %v1529_v39 = vpop.permute.xlu1 %1528 }
 0x382   : > { %v1546_v57 = vmul.f32 %v1529_v39, %v1434_v56  ;;  %v1524_v63 = vpop.permute.xlu0 %1523 }
 0x383   : > { %1843 = vst [vmem:[%s2243_s9 + $0x30] sm:$0xff] %v1831_v59   ;;  %v1545_v0 = vmul.f32 %v1524_v63, %v1433_v47 }
 0x385   : > { %v1836_v42 = vpack.c.bf16 %v1546_v57, %v1545_v0 }
 0x387   : > { %1844 = vst [vmem:[%s2243_s9 + $0x38] sm:$0xff] %v1836_v42  }
 0x388 PF: > { %s14_s21 = sadd.s32 1, %s2131_s21   ;;  %s2815_s15 = smov %s2111_s16 }
 0x389   : > { %p11_p1 = scmp.ge.s32.totalorder %s14_s21, 6   ;;  %s2816_s16 = smov %s2213_s28 }
 0x38a   : > { %s2817_s17 = smov %s2123_s19  ;;  %s2818_s18 = smov %s2127_s20 }
 0x38b   : > { %s2819_s19 = smov %s2822_s22  ;;  %s2820_s20 = smov %s2826_s23 }
 0x38c   :  { %13 = sbr.rel (!%p11_p1) target bundleno = 6 (0x6), region = 126 }

</bundles_post_ra>
